<compile_context>
chip_gen: v5e
topology: v5e:2x2
jax: 0.10.0
libtpu: 0.0.40
codegen_flags: <defaults>
</compile_context>

<pallas_src>
import jax
import jax.numpy as jnp
from jax.experimental import pallas as pl
from jax.experimental.pallas import tpu as pltpu

BERT_DIM = 768     # frozen BERT hidden size (text [CLS] embedding)
STRUCT_DIM = 64    # structural_mlp_hidden_dim
LLM_DIM = 768      # llm_embedding_dim
TM_MAX = 512       # rows per grid step for large N (mem-bound sweet spot, ~85% of HBM roofline)


def _round_up(x: int, m: int) -> int:
    return ((x + m - 1) // m) * m


def _adapter_kernel(xt_ref, idx_ref, tbl_ref, wft_ref, o_ref):
    """out = text @ Wf_text + fused_table[idx]

    xt_ref : (tm, 768)  f32   text [CLS] block (cast to bf16 in-register for the MXU)
    idx_ref: (tm, 1)    int32 element index 0/1/2 per row
    tbl_ref: (3, 768)   f32   precomputed structural rows (MLP + Wf_struct + bias folded in)
    wft_ref: (768, 768) bf16  text part of the fusion weight
    o_ref  : (tm, 768)  f32
    """
    # MXU matmul: bf16 operands, f32 accumulation.
    acc = jnp.dot(xt_ref[...].astype(jnp.bfloat16), wft_ref[...],
                  preferred_element_type=jnp.float32)
    # Structural contribution: select one of the 3 resident table rows per output
    # row.  Out-of-range indices fall through to row 2 (mirrors XLA's clamping
    # gather for idx > 2); cheaper and safer than an in-kernel gather.
    idx = idx_ref[...]                                      # (tm, 1)
    sadd = jnp.where(idx == 0, tbl_ref[0:1, :],
                     jnp.where(idx == 1, tbl_ref[1:2, :], tbl_ref[2:3, :]))
    o_ref[...] = (acc + sadd).astype(o_ref.dtype)


def prepare_adapter(emb_table, params):
    """One-time, batch-independent preparation (run OUTSIDE the per-call hot path):
       - fold structural_embedding -> structural_mlp -> Wf_struct -> +bias into a
         (3, 768) f32 table (exact: the structural branch only has 3 distinct inputs),
       - cast the text part of the fusion weight to bf16 once (avoids a per-call
         f32->bf16 convert pass over 2.25 MiB of HBM)."""
    w1, b1, w2, b2, wft, wfs, bf = params
    s = jnp.maximum(emb_table @ w1 + b1, 0.0) @ w2 + b2     # structural_mlp -> (3, 64)
    fused_table = s @ wfs + bf                              # (3, 768), includes fusion bias
    return wft.astype(jnp.bfloat16), fused_table


@jax.jit
def knowledge_adapter_forward(text_emb, struct_idx, wft_bf16, fused_table):
    """text_emb:    [N, 768] f32   (frozen-BERT [CLS] vectors)
       struct_idx:  [N]      int32 (element index 0/1/2 per row)
       wft_bf16:    [768, 768] bf16  text slice of fusion_projection weight ([in, out])
       fused_table: [3, 768] f32   precomputed structural rows (from prepare_adapter)
       returns:     [N, 768] f32"""
    n = text_emb.shape[0]
    if n == 0:
        return jnp.zeros((0, LLM_DIM), jnp.float32)

    # Row tiling.  Small N: one grid step whose block equals the full array
    # (block_shape == array dims is always legal -> no padding, no output slice).
    # Mid N: two balanced steps so both v7x TensorCores get work under
    # dimension_semantics=("parallel",).  Large N: 512-row tiles; the last block
    # may be partial (Pallas masks the edge).
    if n <= TM_MAX:
        tm = n
    elif n <= 2 * TM_MAX:
        tm = _round_up((n + 1) // 2, 8)
    else:
        tm = TM_MAX
    grid_steps = pl.cdiv(n, tm)

    idx2d = struct_idx.astype(jnp.int32).reshape(n, 1)      # 4 B/row index stream

    out = pl.pallas_call(
        _adapter_kernel,
        out_shape=jax.ShapeDtypeStruct((n, LLM_DIM), jnp.float32),
        grid_spec=pltpu.PrefetchScalarGridSpec(
            num_scalar_prefetch=0,
            grid=(grid_steps,),
            in_specs=[
                pl.BlockSpec((tm, BERT_DIM), lambda i: (i, 0)),      # text (f32, cast in-kernel)
                pl.BlockSpec((tm, 1), lambda i: (i, 0)),             # struct idx (int32)
                pl.BlockSpec((3, LLM_DIM), lambda i: (0, 0)),        # fused table (resident, 9 KiB)
                pl.BlockSpec((BERT_DIM, LLM_DIM), lambda i: (0, 0)), # Wf_text (bf16, resident)
            ],
            out_specs=pl.BlockSpec((tm, LLM_DIM), lambda i: (i, 0)),
        ),
        compiler_params=pltpu.CompilerParams(
            dimension_semantics=("parallel",)),   # megacore-splittable when grid >= 2
    )(text_emb, idx2d, fused_table, wft_bf16)
    return out


def init_params(key):
    """Deterministic synthetic parameters matching the module's shapes.
    PyTorch Linear stores W as [out, in]; we store the transposed [in, out]
    layout consumed directly as y = x @ W + b.  fusion_projection's weight is
    split along its input axis into the text part (768) and struct part (64)."""
    ks = jax.random.split(key, 8)
    emb_table = jax.random.normal(ks[0], (3, STRUCT_DIM), jnp.float32) * 0.02
    w1 = jax.random.normal(ks[1], (STRUCT_DIM, STRUCT_DIM), jnp.float32) * 0.05
    b1 = jax.random.normal(ks[2], (1, STRUCT_DIM), jnp.float32) * 0.01
    w2 = jax.random.normal(ks[3], (STRUCT_DIM, STRUCT_DIM), jnp.float32) * 0.05
    b2 = jax.random.normal(ks[4], (1, STRUCT_DIM), jnp.float32) * 0.01
    wft = jax.random.normal(ks[5], (BERT_DIM, LLM_DIM), jnp.float32) * 0.02
    wfs = jax.random.normal(ks[6], (STRUCT_DIM, LLM_DIM), jnp.float32) * 0.02
    bf = jax.random.normal(ks[7], (1, LLM_DIM), jnp.float32) * 0.01
    return emb_table, (w1, b1, w2, b2, wft, wfs, bf)


def reference_forward(text_emb, struct_idx, emb_table, params):
    """Pure-f32 reference with the module's original structure:
    fusion_projection(concat(text, structural_mlp(structural_embedding(idx))))."""
    w1, b1, w2, b2, wft, wfs, bf = params
    struct_emb = emb_table[struct_idx]
    s = jnp.maximum(struct_emb @ w1 + b1, 0.0) @ w2 + b2
    return text_emb @ wft + s @ wfs + bf


if __name__ == "__main__":
    key = jax.random.PRNGKey(0)
    k_param, k_text = jax.random.split(key)

    emb_table, params = init_params(k_param)

    # Synthetic reasoning subgraph: 2 paths x 4 triples -> 8 triples -> N = 24 elements.
    num_paths, triples_per_path = 2, 4
    num_triples = num_paths * triples_per_path
    n_elements = num_triples * 3

    # TODO(synk): the frozen BERT text encoder + Gemini tokenizer have no Pallas
    # equivalent; their per-element [CLS] outputs are synthesized deterministically.
    text_emb = jax.random.normal(k_text, (n_elements, BERT_DIM), jnp.float32)

    # structural index cycles 0 (head), 1 (relation), 2 (tail) per triple.
    struct_idx = jnp.tile(jnp.arange(3, dtype=jnp.int32), num_triples)

    # One-time prep (outside the jitted hot path): fold structural branch, cast weight.
    wft_bf16, fused_table = prepare_adapter(emb_table, params)

    out = knowledge_adapter_forward(text_emb, struct_idx, wft_bf16, fused_table)
    out = jax.block_until_ready(out)
    assert out.shape == (n_elements, LLM_DIM)

    # (a) tight check against a reference using the same bf16-rounded matmul operands
    w1, b1, w2, b2, wft, wfs, bf = params
    s_ref = jnp.maximum(emb_table @ w1 + b1, 0.0) @ w2 + b2
    struct_add_ref = (s_ref @ wfs + bf)[struct_idx]
    ref_bf16 = (text_emb.astype(jnp.bfloat16).astype(jnp.float32)
                @ wft.astype(jnp.bfloat16).astype(jnp.float32)) + struct_add_ref
    assert jnp.allclose(out, ref_bf16, atol=2e-3, rtol=2e-3)

    # (b) check against the exact f32 module semantics; tolerance sized for the
    #     bf16 matmul operands (accumulation is f32).  Intentional, documented
    #     deviation: matmul operands are bf16, so results are not bit-identical.
    ref = reference_forward(text_emb, struct_idx, emb_table, params)
    assert jnp.allclose(out, ref, atol=2e-2, rtol=2e-2)

    print("KERNEL_OK")
</pallas_src>

<mosaic_0001>
module attributes {stable_mosaic.version = 11 : i64} {
  func.func @_adapter_kernel(%arg0: i32, %arg1: memref<24x768xf32, #tpu.memory_space<vmem>>, %arg2: memref<24x1xi32, #tpu.memory_space<vmem>>, %arg3: memref<3x768xf32, #tpu.memory_space<vmem>>, %arg4: memref<768x768xbf16, #tpu.memory_space<vmem>>, %arg5: memref<24x768xf32, #tpu.memory_space<vmem>>) attributes {dimension_semantics = [#tpu.dimension_semantics<parallel>], iteration_bounds = array<i64: 1>, scalar_prefetch = 0 : i64, scratch_operands = 0 : i64, tpu.core_type = #tpu.core_type<tc>, window_params = [{transform_indices = @transform_0, window_bounds = array<i64: 24, 768>}, {transform_indices = @transform_1, window_bounds = array<i64: 24, 1>}, {pipeline_mode = #tpu.pipeline_mode<synchronous>, transform_indices = @transform_2, window_bounds = array<i64: 3, 768>}, {pipeline_mode = #tpu.pipeline_mode<synchronous>, transform_indices = @transform_3, window_bounds = array<i64: 768, 768>}, {transform_indices = @transform_4, window_bounds = array<i64: 24, 768>}]} {
    %c0 = arith.constant 0 : index
    %c0_0 = arith.constant 0 : index
    %0 = vector.load %arg1[%c0, %c0_0] : memref<24x768xf32, #tpu.memory_space<vmem>>, vector<24x768xf32>
    %1 = arith.truncf %0 : vector<24x768xf32> to vector<24x768xbf16>
    %c0_1 = arith.constant 0 : index
    %c0_2 = arith.constant 0 : index
    %2 = vector.load %arg4[%c0_1, %c0_2] : memref<768x768xbf16, #tpu.memory_space<vmem>>, vector<768x768xbf16>
    %cst = arith.constant dense<0.000000e+00> : vector<24x768xf32>
    %3 = tpu.matmul %1, %2, %cst {dimension_numbers = #tpu.dot_dimension_numbers<[1], [0], [0], [1], [0, 0, 1, 1], [], []>} : vector<24x768xbf16>, vector<768x768xbf16>, vector<24x768xf32> -> vector<24x768xf32>
    %c0_3 = arith.constant 0 : index
    %c0_4 = arith.constant 0 : index
    %4 = vector.load %arg2[%c0_3, %c0_4] : memref<24x1xi32, #tpu.memory_space<vmem>>, vector<24x1xi32>
    %c0_i32 = arith.constant 0 : i32
    %5 = vector.broadcast %c0_i32 : i32 to vector<24x1xi32>
    %6 = arith.cmpi eq, %4, %5 : vector<24x1xi32>
    %c0_5 = arith.constant 0 : index
    %c0_6 = arith.constant 0 : index
    %7 = vector.load %arg3[%c0_5, %c0_6] : memref<3x768xf32, #tpu.memory_space<vmem>>, vector<1x768xf32>
    %c1_i32 = arith.constant 1 : i32
    %8 = vector.broadcast %c1_i32 : i32 to vector<24x1xi32>
    %9 = arith.cmpi eq, %4, %8 : vector<24x1xi32>
    %c1 = arith.constant 1 : index
    %c0_7 = arith.constant 0 : index
    %10 = vector.load %arg3[%c1, %c0_7] : memref<3x768xf32, #tpu.memory_space<vmem>>, vector<1x768xf32>
    %c2 = arith.constant 2 : index
    %c0_8 = arith.constant 0 : index
    %11 = vector.load %arg3[%c2, %c0_8] : memref<3x768xf32, #tpu.memory_space<vmem>>, vector<1x768xf32>
    %12 = vector.shape_cast %9 : vector<24x1xi1> to vector<24x1xi1>
    %13 = vector.broadcast %12 : vector<24x1xi1> to vector<24x768xi1>
    %14 = vector.shape_cast %10 : vector<1x768xf32> to vector<1x768xf32>
    %15 = vector.broadcast %14 : vector<1x768xf32> to vector<24x768xf32>
    %16 = vector.shape_cast %11 : vector<1x768xf32> to vector<1x768xf32>
    %17 = vector.broadcast %16 : vector<1x768xf32> to vector<24x768xf32>
    %18 = arith.select %13, %15, %17 : vector<24x768xi1>, vector<24x768xf32>
    %19 = vector.shape_cast %6 : vector<24x1xi1> to vector<24x1xi1>
    %20 = vector.broadcast %19 : vector<24x1xi1> to vector<24x768xi1>
    %21 = vector.shape_cast %7 : vector<1x768xf32> to vector<1x768xf32>
    %22 = vector.broadcast %21 : vector<1x768xf32> to vector<24x768xf32>
    %23 = arith.select %20, %22, %18 : vector<24x768xi1>, vector<24x768xf32>
    %24 = arith.addf %3, %23 : vector<24x768xf32>
    %c0_9 = arith.constant 0 : index
    %c0_10 = arith.constant 0 : index
    %25 = vector.load %arg5[%c0_9, %c0_10] : memref<24x768xf32, #tpu.memory_space<vmem>>, vector<24x768xf32>
    tpu.vector_store %arg5[%c0_9, %c0_10], %24 {strides = array<i32>} : memref<24x768xf32, #tpu.memory_space<vmem>>, vector<24x768xf32>,
    return
  }
  func.func @transform_0(%arg0: i32) -> (i32, i32) {
    %c0_i32 = arith.constant 0 : i32
    %c0_i32_0 = arith.constant 0 : i32
    return %arg0, %c0_i32 : i32, i32
  }
  func.func @transform_1(%arg0: i32) -> (i32, i32) {
    %c0_i32 = arith.constant 0 : i32
    %c0_i32_0 = arith.constant 0 : i32
    return %arg0, %c0_i32 : i32, i32
  }
  func.func @transform_2(%arg0: i32) -> (i32, i32) {
    %c0_i32 = arith.constant 0 : i32
    %c0_i32_0 = arith.constant 0 : i32
    %c0_i32_1 = arith.constant 0 : i32
    return %c0_i32, %c0_i32_0 : i32, i32
  }
  func.func @transform_3(%arg0: i32) -> (i32, i32) {
    %c0_i32 = arith.constant 0 : i32
    %c0_i32_0 = arith.constant 0 : i32
    %c0_i32_1 = arith.constant 0 : i32
    return %c0_i32, %c0_i32_0 : i32, i32
  }
  func.func @transform_4(%arg0: i32) -> (i32, i32) {
    %c0_i32 = arith.constant 0 : i32
    %c0_i32_0 = arith.constant 0 : i32
    return %arg0, %c0_i32 : i32, i32
  }
}

</mosaic_0001>

<bundles_post_ra>
// kernel: knowledge_adapter_forward.1
= control target key start
LH: loop header
LB: loop body
LE: loop exit
PB: predicated region body
PF: predicated region fallthrough
CT: control target
= control target key end

     0   :  { %9 = vsyncpa [#allocation3], 0  ;;  %s4605_s0 = inlined_call_operand.hbm [shape: f32[24,768], index: 0, kind: input, shape index: {}]   ;;  %s4606_s1 = inlined_call_operand.vmem [shape: s32[24,1], index: 1, kind: input, shape index: {}]   ;;  %s4607_s2 = inlined_call_operand.hbm [shape: f32[3,768], index: 2, kind: input, shape index: {}]   ;;  %s4608_s3 = inlined_call_operand.hbm [shape: bf16[768,768], index: 3, kind: input, shape index: {}]   ;;  %s4609_s4 = inlined_call_operand.hbm [shape: f32[24,768], index: 4, kind: output, shape index: {}]  }
   0x1   :  { %10 = vsyncpa [#allocation6], 0  ;;  %s32_s17 = sshll.u32 %s4607_s2, 4  ;;  %s33_s17 = int_to_ptr.hbm [resolvable:$true] %s32_s17 }
   0x2   :  { %11 = vsyncpa [#allocation4], 0  ;;  %s4183_s18 = smov [#allocation5]   ;;  %s16_s22 = sshll.u32 %s4605_s0, 4  ;;  %s17_s22 = int_to_ptr.hbm [resolvable:$true] %s16_s22 }
   0x3   :  { %s34_s19 = sshll.u32 %s4183_s18, 4  ;;  %s4184_s23 = smov [#allocation2]   ;;  %s35_s19 = int_to_ptr.vmem [resolvable:$true] %s34_s19 }
   0x4   :  { %37 = dma.hbm_to_vmem [thread:$0]  %s33_s17, 384, %s35_s19, [#allocation6]  }
   0x5   :  { %s18_s24 = sshll.u32 %s4184_s23, 4  ;;  %s4185_s25 = smov 768   ;;  %s19_s24 = int_to_ptr.vmem [resolvable:$true] %s18_s24 }
   0x6   :  { %s4186_s26 = smov 48   ;;  %s42_s28 = sshll.u32 %s4608_s3, 4  ;;  %s43_s28 = int_to_ptr.hbm [resolvable:$true] %s42_s28 }
   0x7   :  { %24 = dma.hbm_to_vmem [thread:$0]  %s17_s22, 2304, %s19_s24, [#allocation3], %s4185_s25, %s4185_s25, %s4186_s26  }
   0x8   :  { %s4187_s29 = smov [#allocation7]   ;;  %s4188_s0 = smov 384  }
   0x9   :  { %s44_s30 = sshll.u32 %s4187_s29, 4  ;;  %s4189_s5 = smov 24   ;;  %s45_s30 = int_to_ptr.vmem [resolvable:$true] %s44_s30 }
   0xa   :  { %50 = dma.hbm_to_vmem [thread:$0]  %s43_s28, 36864, %s45_s30, [#allocation6], %s4188_s0, %s4188_s0, %s4189_s5  }
   0xb   :  { %4177 = dma.done.wait [#allocation3], 2304  }
   0xc   :  { %4178 = vsyncadd [#allocation3], 4294964992 }
   0xd   :  { %4179 = dma.done.wait [#allocation6], 37248  }
   0xe   :  { %4180 = vsyncadd [#allocation6], 4294930048  ;;  %v2796_v0 = vld [vmem:[#allocation7 + $0x150] sm:$0xf]  ;;  %v3823_v1 = vld [vmem:[#allocation7 + $0x164] sm:$0xf0] }
   0xf   :  { %v2988_v2 = vld [vmem:[#allocation7 + $0x2d0] sm:$0xf]  ;;  %v2797_v3 = vor.u32 %v3823_v1, %v2796_v0  ;;  %v3871_v4 = vld [vmem:[#allocation7 + $0x2e4] sm:$0xf0]  ;;  %v2772_v11 = vld [vmem:[#allocation7 + $0x120] sm:$0xf] }
  0x10   :  { %v3180_v5 = vld [vmem:[#allocation7 + $0x450] sm:$0xf]  ;;  %v3919_v6 = vld [vmem:[#allocation7 + $0x464] sm:$0xf0]  ;;  %v2989_v7 = vor.u32 %v3871_v4, %v2988_v2  ;;  %v3817_v13 = vld [vmem:[#allocation7 + $0x134] sm:$0xf0] }
  0x11   :  { %v3181_v8 = vor.u32 %v3919_v6, %v3180_v5  ;;  %v3372_v9 = vld [vmem:[#allocation7 + $0x5d0] sm:$0xf]  ;;  %v3967_v10 = vld [vmem:[#allocation7 + $0x5e4] sm:$0xf0]  ;;  %1940 = vmatpush.bf16.msra.mxu0 %v2797_v3  ;;  %v2964_v14 = vld [vmem:[#allocation7 + $0x2a0] sm:$0xf]  ;;  %v2773_v16 = vor.u32 %v3817_v13, %v2772_v11 }
  0x12   :  { %v3373_v12 = vor.u32 %v3967_v10, %v3372_v9  ;;  %v3865_v15 = vld [vmem:[#allocation7 + $0x2b4] sm:$0xf0]  ;;  %1958 = vmatpush.bf16.msra.mxu1 %v2989_v7  ;;  %v3156_v18 = vld [vmem:[#allocation7 + $0x420] sm:$0xf]  ;;  %v2748_v23 = vld [vmem:[#allocation7 + $0xf0] sm:$0xf] }
  0x13   :  { %1976 = vmatpush.bf16.msra.mxu2 %v3181_v8  ;;  %v2965_v17 = vor.u32 %v3865_v15, %v2964_v14  ;;  %v3913_v19 = vld [vmem:[#allocation7 + $0x434] sm:$0xf0]  ;;  %v3348_v20 = vld [vmem:[#allocation7 + $0x5a0] sm:$0xf]  ;;  %v3811_v24 = vld [vmem:[#allocation7 + $0x104] sm:$0xf0] }
  0x14   :  { %1994 = vmatpush.bf16.msra.mxu3 %v3373_v12  ;;  %v3157_v21 = vor.u32 %v3913_v19, %v3156_v18  ;;  %v3961_v22 = vld [vmem:[#allocation7 + $0x5b4] sm:$0xf0]  ;;  %v2940_v26 = vld [vmem:[#allocation7 + $0x270] sm:$0xf]  ;;  %v3859_v27 = vld [vmem:[#allocation7 + $0x284] sm:$0xf0]  ;;  %v2749_v29 = vor.u32 %v3811_v24, %v2748_v23 }
  0x15   :  { %v3349_v25 = vor.u32 %v3961_v22, %v3348_v20  ;;  %v3132_v28 = vld [vmem:[#allocation7 + $0x3f0] sm:$0xf]  ;;  %1941 = vmatpush.bf16.msra.mxu0 %v2773_v16  ;;  %v3907_v30 = vld [vmem:[#allocation7 + $0x404] sm:$0xf0]  ;;  %v2941_v33 = vor.u32 %v3859_v27, %v2940_v26  ;;  %v2724_v35 = vld [vmem:[#allocation7 + $0xc0] sm:$0xf] }
  0x16   :  { %v3324_v31 = vld [vmem:[#allocation7 + $0x570] sm:$0xf]  ;;  %v3955_v32 = vld [vmem:[#allocation7 + $0x584] sm:$0xf0]  ;;  %1959 = vmatpush.bf16.msra.mxu1 %v2965_v17  ;;  %v3133_v34 = vor.u32 %v3907_v30, %v3132_v28  ;;  %v3805_v36 = vld [vmem:[#allocation7 + $0xd4] sm:$0xf0] }
  0x17   :  { %1977 = vmatpush.bf16.msra.mxu2 %v3157_v21  ;;  %v2916_v37 = vld [vmem:[#allocation7 + $0x240] sm:$0xf]  ;;  %v3325_v38 = vor.u32 %v3955_v32, %v3324_v31  ;;  %v3853_v39 = vld [vmem:[#allocation7 + $0x254] sm:$0xf0]  ;;  %v2725_v44 = vor.u32 %v3805_v36, %v2724_v35  ;;  %v2700_v47 = vld [vmem:[#allocation7 + $0x90] sm:$0xf] }
  0x18   :  { %1995 = vmatpush.bf16.msra.mxu3 %v3349_v25  ;;  %v3108_v40 = vld [vmem:[#allocation7 + $0x3c0] sm:$0xf]  ;;  %v3901_v41 = vld [vmem:[#allocation7 + $0x3d4] sm:$0xf0]  ;;  %v2917_v45 = vor.u32 %v3853_v39, %v2916_v37  ;;  %v3799_v48 = vld [vmem:[#allocation7 + $0xa4] sm:$0xf0] }
  0x19   :  { %v3300_v42 = vld [vmem:[#allocation7 + $0x540] sm:$0xf]  ;;  %v3949_v43 = vld [vmem:[#allocation7 + $0x554] sm:$0xf0]  ;;  %1942 = vmatpush.bf16.msra.mxu0 %v2749_v29  ;;  %v3109_v46 = vor.u32 %v3901_v41, %v3108_v40  ;;  %v2892_v49 = vld [vmem:[#allocation7 + $0x210] sm:$0xf]  ;;  %v2701_v56 = vor.u32 %v3799_v48, %v2700_v47 }
  0x1a   :  { %1960 = vmatpush.bf16.msra.mxu1 %v2941_v33  ;;  %v3301_v50 = vor.u32 %v3949_v43, %v3300_v42  ;;  %v3847_v51 = vld [vmem:[#allocation7 + $0x224] sm:$0xf0]  ;;  %v3084_v52 = vld [vmem:[#allocation7 + $0x390] sm:$0xf]  ;;  %v2676_v59 = vld [vmem:[#allocation7 + $0x60] sm:$0xf] }
  0x1b   :  { %1978 = vmatpush.bf16.msra.mxu2 %v3133_v34  ;;  %v3895_v53 = vld [vmem:[#allocation7 + $0x3a4] sm:$0xf0]  ;;  %v3276_v54 = vld [vmem:[#allocation7 + $0x510] sm:$0xf]  ;;  %v2893_v57 = vor.u32 %v3847_v51, %v2892_v49  ;;  %v3793_v60 = vld [vmem:[#allocation7 + $0x74] sm:$0xf0] }
  0x1c   :  { %1996 = vmatpush.bf16.msra.mxu3 %v3325_v38  ;;  %v3943_v55 = vld [vmem:[#allocation7 + $0x524] sm:$0xf0]  ;;  %v3085_v58 = vor.u32 %v3895_v53, %v3084_v52  ;;  %v2868_v61 = vld [vmem:[#allocation7 + $0x1e0] sm:$0xf]  ;;  %v3841_v63 = vld [vmem:[#allocation7 + $0x1f4] sm:$0xf0]  ;;  %v2677_v4 = vor.u32 %v3793_v60, %v2676_v59 }
  0x1d   :  { %1943 = vmatpush.bf16.msra.mxu0 %v2725_v44  ;;  %v3277_v62 = vor.u32 %v3943_v55, %v3276_v54  ;;  %v3060_v0 = vld [vmem:[#allocation7 + $0x360] sm:$0xf]  ;;  %v3889_v1 = vld [vmem:[#allocation7 + $0x374] sm:$0xf0]  ;;  %v2652_v5 = vld [vmem:[#allocation7 + $0x30] sm:$0xf]  ;;  %v2869_v6 = vor.u32 %v3841_v63, %v2868_v61 }
  0x1e   :  { %1961 = vmatpush.bf16.msra.mxu1 %v2917_v45  ;;  %v3252_v2 = vld [vmem:[#allocation7 + $0x4e0] sm:$0xf]  ;;  %v3937_v3 = vld [vmem:[#allocation7 + $0x4f4] sm:$0xf0]  ;;  %v3061_v7 = vor.u32 %v3889_v1, %v3060_v0  ;;  %v3787_v8 = vld [vmem:[#allocation7 + $0x44] sm:$0xf0] }
  0x1f   :  { %1979 = vmatpush.bf16.msra.mxu2 %v3109_v46  ;;  %v2844_v9 = vld [vmem:[#allocation7 + $0x1b0] sm:$0xf]  ;;  %v3835_v10 = vld [vmem:[#allocation7 + $0x1c4] sm:$0xf0]  ;;  %v3253_v11 = vor.u32 %v3937_v3, %v3252_v2  ;;  %v2628_v16 = vld [vmem:[#allocation7] sm:$0xf]  ;;  %v2653_v18 = vor.u32 %v3787_v8, %v2652_v5 }
  0x20   :  { %1997 = vmatpush.bf16.msra.mxu3 %v3301_v50  ;;  %v3036_v12 = vld [vmem:[#allocation7 + $0x330] sm:$0xf]  ;;  %v3883_v13 = vld [vmem:[#allocation7 + $0x344] sm:$0xf0]  ;;  %v4190_v17 = vmov 0   ;;  %v2845_v22 = vor.u32 %v3835_v10, %v2844_v9  ;;  %v63_v29 = vld [vmem:[#allocation2] sm:$0xff] }
  0x21   :  { %1944 = vmatpush.bf16.msra.mxu0 %v2701_v56  ;;  %v3228_v14 = vld [vmem:[#allocation7 + $0x4b0] sm:$0xf]  ;;  %v3931_v15 = vld [vmem:[#allocation7 + $0x4c4] sm:$0xf0]  ;;  %4076 = vset.pattern.permute.xlu1 %v4190_v17  ;;  %v3781_v19 = vld [vmem:[#allocation7 + $0x14] sm:$0xf0]  ;;  %v3037_v23 = vor.u32 %v3883_v13, %v3036_v12 }
  0x22   :  { %1962 = vmatpush.bf16.msra.mxu1 %v2893_v57  ;;  %4075 = vset.pattern.permute.xlu0 %v4190_v17  ;;  %v2820_v20 = vld [vmem:[#allocation7 + $0x180] sm:$0xf]  ;;  %v3829_v21 = vld [vmem:[#allocation7 + $0x194] sm:$0xf0]  ;;  %v3229_v27 = vor.u32 %v3931_v15, %v3228_v14  ;;  %v69_v30 = vld [vmem:[#allocation2 + $0x30] sm:$0xff]  ;;  %v2629_v38 = vor.u32 %v3781_v19, %v2628_v16  ;;  %s2612_s14 = sshll.u32 %s4609_s4, 4  ;;  %s2613_s14 = int_to_ptr.hbm [resolvable:$true] %s2612_s14 }
  0x23   :  { %1980 = vmatpush.bf16.msra.mxu2 %v3085_v58  ;;  %4077 = vset.pattern.permute.xlu2 %v4190_v17  ;;  %v3012_v24 = vld [vmem:[#allocation7 + $0x300] sm:$0xf]  ;;  %v3877_v25 = vld [vmem:[#allocation7 + $0x314] sm:$0xf0]  ;;  %v70_v32 = vld [vmem:[#allocation2 + $0x38] sm:$0xff]  ;;  %v2821_v42 = vor.u32 %v3829_v21, %v2820_v20  ;;  %v4242_v53 = vpack.c.bf16 %v69_v30, %v63_v29 }
  0x24   :  { %1998 = vmatpush.bf16.msra.mxu3 %v3277_v62  ;;  %v3204_v26 = vld [vmem:[#allocation7 + $0x480] sm:$0xf]  ;;  %v3925_v28 = vld [vmem:[#allocation7 + $0x494] sm:$0xf0]  ;;  %v65_v33 = vld [vmem:[#allocation2 + $0x10] sm:$0xff]  ;;  %v3013_v43 = vor.u32 %v3877_v25, %v3012_v24 }
  0x25   :  { %1945 = vmatpush.bf16.msra.mxu0 %v2677_v4  ;;  %v64_v31 = vld [vmem:[#allocation2 + $0x8] sm:$0xff]  ;;  %v71_v34 = vld [vmem:[#allocation2 + $0x40] sm:$0xff]  ;;  %v3820_v35 = vld [vmem:[#allocation7 + $0x154] sm:$0xf]  ;;  %v3205_v48 = vor.u32 %v3925_v28, %v3204_v26 }
  0x26   :  { %1963 = vmatpush.bf16.msra.mxu1 %v2869_v6  ;;  %v2798_v36 = vld [vmem:[#allocation7 + $0x168] sm:$0xf0]  ;;  %v3868_v39 = vld [vmem:[#allocation7 + $0x2d4] sm:$0xf]  ;;  %v381_v41 = vld [vmem:[%s4606_s1] sm:$0xff]  ;;  %v4245_v58 = vpack.c.bf16 %v70_v32, %v64_v31  ;;  %v4247_v59 = vpack.c.bf16 %v71_v34, %v65_v33 }
  0x27   :  { %1981 = vmatpush.bf16.msra.mxu2 %v3061_v7  ;;  %v4235_v37 = vld [vmem:[%s4606_s1 + $0x10] sm:$0xff]  ;;  %v66_v44 = vld [vmem:[#allocation2 + $0x18] sm:$0xff]  ;;  %v72_v45 = vld [vmem:[#allocation2 + $0x48] sm:$0xff]  ;;  %vm388_vm1 = vcmp.eq.s32.totalorder %v381_v41, 1  ;;  %v2801_v49 = vor.u32 %v3820_v35, %v2798_v36  ;;  %vm384_vm2 = vcmp.eq.s32.totalorder %v381_v41, 0 }
  0x28   :  { %1999 = vmatpush.bf16.msra.mxu3 %v3253_v11  ;;  %v2990_v40 = vld [vmem:[#allocation7 + $0x2e8] sm:$0xf0]  ;;  %vm390_vm0 = vcmp.eq.s32.totalorder %v4235_v37, 1  ;;  %v3564_v46 = vld [vmem:[#allocation7 + $0x750] sm:$0xf]  ;;  %v395_v57 = vsel %vm388_vm1, 1, %v4190_v17  ;;  %v4249_v62 = vpack.c.bf16 %v72_v45, %v66_v44 }
  0x29   :  { %1946 = vmatpush.bf16.msra.mxu0 %v2653_v18  ;;  %v397_v47 = vsel %vm390_vm0, 1, %v4190_v17  ;;  %v4015_v50 = vld [vmem:[#allocation7 + $0x764] sm:$0xf0]  ;;  %v3756_v51 = vld [vmem:[#allocation7 + $0x8d0] sm:$0xf]  ;;  %v2993_v54 = vor.u32 %v3868_v39, %v2990_v40  ;;  %399 = vperm.xlu0 %4075, %v395_v57   ;;  %v4254_v5 = vld [vmem:[%s4606_s1 + $0x8] sm:$0xff] }
  0x2a   :  { %1964 = vmatpush.bf16.msra.mxu1 %v2845_v22  ;;  %v4063_v52 = vld [vmem:[#allocation7 + $0x8e4] sm:$0xf0]  ;;  %405 = vperm.xlu1 %4076, %v397_v47   ;;  %v3814_v55 = vld [vmem:[#allocation7 + $0x124] sm:$0xf]  ;;  %v2774_v56 = vld [vmem:[#allocation7 + $0x138] sm:$0xf0]  ;;  %v3565_v63 = vor.u32 %v4015_v50, %v3564_v46 }
  0x2b   :  { %1982 = vmatpush.bf16.msra.mxu2 %v3037_v23  ;;  %v3862_v60 = vld [vmem:[#allocation7 + $0x2a4] sm:$0xf]  ;;  %v2966_v61 = vld [vmem:[#allocation7 + $0x2b8] sm:$0xf0]  ;;  %v3540_v0 = vld [vmem:[#allocation7 + $0x720] sm:$0xf]  ;;  %v3757_v1 = vor.u32 %v4063_v52, %v3756_v51  ;;  %v2777_v2 = vor.u32 %v3814_v55, %v2774_v56 }
  0x2c   :  { %2000 = vmatpush.bf16.msra.mxu3 %v3229_v27  ;;  %v4009_v3 = vld [vmem:[#allocation7 + $0x734] sm:$0xf0]  ;;  %v3732_v4 = vld [vmem:[#allocation7 + $0x8a0] sm:$0xf]  ;;  %v2969_v6 = vor.u32 %v3862_v60, %v2966_v61  ;;  %v3808_v8 = vld [vmem:[#allocation7 + $0xf4] sm:$0xf] }
  0x2d   :  { %1947 = vmatpush.bf16.msra.mxu0 %v2629_v38  ;;  %v4057_v7 = vld [vmem:[#allocation7 + $0x8b4] sm:$0xf0]  ;;  %v2750_v9 = vld [vmem:[#allocation7 + $0x108] sm:$0xf0]  ;;  %v3856_v10 = vld [vmem:[#allocation7 + $0x274] sm:$0xf]  ;;  %v3541_v13 = vor.u32 %v4009_v3, %v3540_v0 }
  0x2e   :  { %1965 = vmatpush.bf16.msra.mxu1 %v2821_v42  ;;  %v2942_v11 = vld [vmem:[#allocation7 + $0x288] sm:$0xf0]  ;;  %v454_v12 = vsel %vm384_vm2, 1, %v4190_v17  ;;  %v3516_v14 = vld [vmem:[#allocation7 + $0x6f0] sm:$0xf]  ;;  %vm389_vm3 = vcmp.eq.s32.totalorder %v4254_v5, 1  ;;  %v3733_v15 = vor.u32 %v4057_v7, %v3732_v4  ;;  %v2753_v16 = vor.u32 %v3808_v8, %v2750_v9 }
  0x2f   :  { %1983 = vmatpush.bf16.msra.mxu2 %v3013_v43  ;;  %v4003_v18 = vld [vmem:[#allocation7 + $0x704] sm:$0xf0]  ;;  %v3708_v19 = vld [vmem:[#allocation7 + $0x870] sm:$0xf]  ;;  %v396_v20 = vsel %vm389_vm3, 1, %v4190_v17  ;;  %v2945_v21 = vor.u32 %v3856_v10, %v2942_v11  ;;  %v75_v38 = vld [vmem:[#allocation2 + $0x60] sm:$0xff] }
  0x30   :  { %2001 = vmatpush.bf16.msra.mxu3 %v3205_v48  ;;  %1948 = vmatmul.bf16.vlgmr.msra.gmra.mxu0 %v4242_v53  ;;  %v4051_v22 = vld [vmem:[#allocation7 + $0x884] sm:$0xf0]  ;;  %v3802_v23 = vld [vmem:[#allocation7 + $0xc4] sm:$0xf]  ;;  %v2726_v24 = vld [vmem:[#allocation7 + $0xd8] sm:$0xf0]  ;;  %v3517_v27 = vor.u32 %v4003_v18, %v3516_v14  ;;  %v4264_v50 = vpack.c.bf16 %v75_v38, %v75_v38 }
  0x31   :  { %1966 = vmatmul.bf16.vlgmr.msra.gmra.mxu1 %v4245_v58  ;;  %2012 = vmatpush.bf16.msrb.mxu0 %v3565_v63  ;;  %v3850_v25 = vld [vmem:[#allocation7 + $0x244] sm:$0xf]  ;;  %v2918_v26 = vld [vmem:[#allocation7 + $0x258] sm:$0xf0]  ;;  %v3709_v28 = vor.u32 %v4051_v22, %v3708_v19  ;;  %v2729_v29 = vor.u32 %v3802_v23, %v2726_v24  ;;  %v3492_v30 = vld [vmem:[#allocation7 + $0x6c0] sm:$0xf] }
  0x32   :  { %1984 = vmatmul.bf16.vlgmr.msra.gmra.mxu2 %v4247_v59  ;;  %2030 = vmatpush.bf16.msrb.mxu1 %v3757_v1  ;;  %v3997_v31 = vld [vmem:[#allocation7 + $0x6d4] sm:$0xf0]  ;;  %v3684_v32 = vld [vmem:[#allocation7 + $0x840] sm:$0xf]  ;;  %v2921_v33 = vor.u32 %v3850_v25, %v2918_v26  ;;  %v3796_v35 = vld [vmem:[#allocation7 + $0x94] sm:$0xf] }
  0x33   :  { %2048 = vmatpush.bf16.msrb.mxu2 %v2801_v49  ;;  %2002 = vmatmul.bf16.vlgmr.msra.gmra.mxu3 %v4249_v62  ;;  %v4045_v34 = vld [vmem:[#allocation7 + $0x854] sm:$0xf0]  ;;  %v2702_v36 = vld [vmem:[#allocation7 + $0xa8] sm:$0xf0]  ;;  %v3844_v39 = vld [vmem:[#allocation7 + $0x214] sm:$0xf]  ;;  %v3493_v41 = vor.u32 %v3997_v31, %v3492_v30 }
  0x34   :  { %2066 = vmatpush.bf16.msrb.mxu3 %v2993_v54  ;;  %458 = vperm.xlu1 %4076, %v454_v12   ;;  %v2894_v40 = vld [vmem:[#allocation7 + $0x228] sm:$0xf0]  ;;  %v76_v42 = vld [vmem:[#allocation2 + $0x68] sm:$0xff]  ;;  %v78_v44 = vld [vmem:[#allocation2 + $0x78] sm:$0xff]  ;;  %v3685_v45 = vor.u32 %v4045_v34, %v3684_v32  ;;  %v2705_v46 = vor.u32 %v3796_v35, %v2702_v36  ;;  %vm385_vm4 = vcmp.eq.s32.totalorder %v4254_v5, 0  ;;  %vm386_vm5 = vcmp.eq.s32.totalorder %v4235_v37, 0 }
  0x35   :  { %402 = vperm.xlu0 %4075, %v396_v20   ;;  %2013 = vmatpush.bf16.msrb.mxu0 %v3541_v13  ;;  %v77_v43 = vld [vmem:[#allocation2 + $0x70] sm:$0xff]  ;;  %v3468_v47 = vld [vmem:[#allocation7 + $0x690] sm:$0xf]  ;;  %v2897_v51 = vor.u32 %v3844_v39, %v2894_v40  ;;  %v3790_v54 = vld [vmem:[#allocation7 + $0x64] sm:$0xf]  ;;  %v4266_v56 = vpack.c.bf16 %v76_v42, %v76_v42  ;;  %v4270_v63 = vpack.c.bf16 %v78_v44, %v78_v44  ;;  %v455_v13 = vsel %vm385_vm4, 1, %v4190_v17 }
  0x36   :  { %2031 = vmatpush.bf16.msrb.mxu1 %v3733_v15  ;;  %v3991_v48 = vld [vmem:[#allocation7 + $0x6a4] sm:$0xf0]  ;;  %v3660_v49 = vld [vmem:[#allocation7 + $0x810] sm:$0xf]  ;;  %v2678_v55 = vld [vmem:[#allocation7 + $0x78] sm:$0xf0]  ;;  %v4268_v57 = vpack.c.bf16 %v77_v43, %v77_v43  ;;  %461 = vperm.xlu2 %4077, %v455_v13  }
  0x37   :  { %2049 = vmatpush.bf16.msrb.mxu2 %v2777_v2  ;;  %v4039_v52 = vld [vmem:[#allocation7 + $0x824] sm:$0xf0]  ;;  %v3838_v60 = vld [vmem:[#allocation7 + $0x1e4] sm:$0xf]  ;;  %v2870_v61 = vld [vmem:[#allocation7 + $0x1f8] sm:$0xf0]  ;;  %v3469_v0 = vor.u32 %v3991_v48, %v3468_v47  ;;  %v2681_v2 = vor.u32 %v3790_v54, %v2678_v55 }
  0x38   :  { %2067 = vmatpush.bf16.msrb.mxu3 %v2969_v6  ;;  %v3661_v1 = vor.u32 %v4039_v52, %v3660_v49  ;;  %v3444_v3 = vld [vmem:[#allocation7 + $0x660] sm:$0xf]  ;;  %v3985_v4 = vld [vmem:[#allocation7 + $0x674] sm:$0xf0]  ;;  %v2873_v7 = vor.u32 %v3838_v60, %v2870_v61  ;;  %v3784_v9 = vld [vmem:[#allocation7 + $0x34] sm:$0xf] }
  0x39   :  { %2014 = vmatpush.bf16.msrb.mxu0 %v3517_v27  ;;  %v3636_v6 = vld [vmem:[#allocation7 + $0x7e0] sm:$0xf]  ;;  %v4033_v8 = vld [vmem:[#allocation7 + $0x7f4] sm:$0xf0]  ;;  %v2654_v10 = vld [vmem:[#allocation7 + $0x48] sm:$0xf0]  ;;  %v3445_v14 = vor.u32 %v3985_v4, %v3444_v3 }
  0x3a   :  { %2032 = vmatpush.bf16.msrb.mxu1 %v3709_v28  ;;  %v3832_v11 = vld [vmem:[#allocation7 + $0x1b4] sm:$0xf]  ;;  %v2846_v12 = vld [vmem:[#allocation7 + $0x1c8] sm:$0xf0]  ;;  %v3420_v15 = vld [vmem:[#allocation7 + $0x630] sm:$0xf]  ;;  %v2657_v18 = vor.u32 %v3784_v9, %v2654_v10 }
  0x3b   :  { %2050 = vmatpush.bf16.msrb.mxu2 %v2753_v16  ;;  %v3637_v16 = vor.u32 %v4033_v8, %v3636_v6  ;;  %v3979_v19 = vld [vmem:[#allocation7 + $0x644] sm:$0xf0]  ;;  %v3612_v20 = vld [vmem:[#allocation7 + $0x7b0] sm:$0xf]  ;;  %v2849_v22 = vor.u32 %v3832_v11, %v2846_v12  ;;  %v3778_v23 = vld [vmem:[#allocation7 + $0x4] sm:$0xf] }
  0x3c   :  { %2068 = vmatpush.bf16.msrb.mxu3 %v2945_v21  ;;  %v4027_v21 = vld [vmem:[#allocation7 + $0x7c4] sm:$0xf0]  ;;  %v2630_v24 = vld [vmem:[#allocation7 + $0x18] sm:$0xf0]  ;;  %v3826_v25 = vld [vmem:[#allocation7 + $0x184] sm:$0xf]  ;;  %v3421_v28 = vor.u32 %v3979_v19, %v3420_v15 }
  0x3d   :  { %2015 = vmatpush.bf16.msrb.mxu0 %v3493_v41  ;;  %v2822_v5 = vld [vmem:[#allocation7 + $0x198] sm:$0xf0]  ;;  %v4012_v26 = vld [vmem:[#allocation7 + $0x754] sm:$0xf]  ;;  %v3566_v27 = vld [vmem:[#allocation7 + $0x768] sm:$0xf0]  ;;  %v3613_v32 = vor.u32 %v4027_v21, %v3612_v20 }
  0x3e   :  { %2033 = vmatpush.bf16.msrb.mxu1 %v3685_v45  ;;  %v4060_v30 = vld [vmem:[#allocation7 + $0x8d4] sm:$0xf]  ;;  %v3758_v31 = vld [vmem:[#allocation7 + $0x8e8] sm:$0xf0]  ;;  %v3973_v34 = vld [vmem:[#allocation7 + $0x614] sm:$0xf0]  ;;  %v2825_v38 = vor.u32 %v3826_v25, %v2822_v5  ;;  %v3569_v40 = vor.u32 %v4012_v26, %v3566_v27 }
  0x3f   :  { %2051 = vmatpush.bf16.msrb.mxu2 %v2729_v29  ;;  %v3396_v29 = vld [vmem:[#allocation7 + $0x600] sm:$0xf]  ;;  %v4021_v36 = vld [vmem:[#allocation7 + $0x794] sm:$0xf0]  ;;  %v3916_v41 = vld [vmem:[#allocation7 + $0x454] sm:$0xf]  ;;  %v3761_v44 = vor.u32 %v4060_v30, %v3758_v31 }
  0x40   :  { %2069 = vmatpush.bf16.msrb.mxu3 %v2921_v33  ;;  %1953 = vmatmul.bf16.gmra.mxu0 %v4264_v50  ;;  %v2633_v33 = vor.u32 %v3778_v23, %v2630_v24  ;;  %v3588_v35 = vld [vmem:[#allocation7 + $0x780] sm:$0xf]  ;;  %v67_v39 = vld [vmem:[#allocation2 + $0x20] sm:$0xff]  ;;  %v3182_v42 = vld [vmem:[#allocation7 + $0x468] sm:$0xf0]  ;;  %v3397_v48 = vor.u32 %v3973_v34, %v3396_v29  ;;  %v456_v10 = vsel %vm386_vm5, 1, %v4190_v17 }
  0x41   :  { %1971 = vmatmul.bf16.gmra.mxu1 %v4266_v56  ;;  %2016 = vmatpush.bf16.msrb.mxu0 %v3469_v0  ;;  %v3964_v43 = vld [vmem:[#allocation7 + $0x5d4] sm:$0xf]  ;;  %v3374_v45 = vld [vmem:[#allocation7 + $0x5e8] sm:$0xf0]  ;;  %v3542_v47 = vld [vmem:[#allocation7 + $0x738] sm:$0xf0]  ;;  %v3589_v54 = vor.u32 %v4021_v36, %v3588_v35  ;;  %v3185_v55 = vor.u32 %v3916_v41, %v3182_v42 }
  0x42   :  { %1989 = vmatmul.bf16.gmra.mxu2 %v4268_v57  ;;  %2034 = vmatpush.bf16.msrb.mxu1 %v3661_v1  ;;  %v73_v49 = vld [vmem:[#allocation2 + $0x50] sm:$0xff]  ;;  %v74_v52 = vld [vmem:[#allocation2 + $0x58] sm:$0xff]  ;;  %v4054_v60 = vld [vmem:[#allocation7 + $0x8a4] sm:$0xf]  ;;  %v3377_v1 = vor.u32 %v3964_v43, %v3374_v45  ;;  %s4191_s1 = smov [#allocation8]  }
  0x43   :  { %2052 = vmatpush.bf16.msrb.mxu2 %v2705_v46  ;;  %2007 = vmatmul.bf16.gmra.mxu3 %v4270_v63  ;;  %v4006_v46 = vld [vmem:[#allocation7 + $0x724] sm:$0xf]  ;;  %v3734_v61 = vld [vmem:[#allocation7 + $0x8b8] sm:$0xf0]  ;;  %v4000_v8 = vld [vmem:[#allocation7 + $0x6f4] sm:$0xf] }
  0x44   :  { %2070 = vmatpush.bf16.msrb.mxu3 %v2897_v51  ;;  %v68_v51 = vld [vmem:[#allocation2 + $0x28] sm:$0xff]  ;;  %v3158_v3 = vld [vmem:[#allocation7 + $0x438] sm:$0xf0]  ;;  %v3518_v9 = vld [vmem:[#allocation7 + $0x708] sm:$0xf0]  ;;  %464 = vperm.xlu2 %4077, %v456_v10   ;;  %v3737_v12 = vor.u32 %v4054_v60, %v3734_v61  ;;  %s2610_s11 = sshll.u32 %s4191_s1, 4  ;;  %s2611_s11 = int_to_ptr.vmem [resolvable:$true] %s2610_s11 }
  0x45   :  { %2017 = vmatpush.bf16.msrb.mxu0 %v3445_v14  ;;  %v3910_v0 = vld [vmem:[#allocation7 + $0x424] sm:$0xf]  ;;  %v3350_v6 = vld [vmem:[#allocation7 + $0x5b8] sm:$0xf0]  ;;  %v4286_v11 = vpack.c.bf16 %v74_v52, %v68_v51  ;;  %v4048_v14 = vld [vmem:[#allocation7 + $0x874] sm:$0xf] }
  0x46   :  { %2035 = vmatpush.bf16.msrb.mxu1 %v3637_v16  ;;  %v3958_v4 = vld [vmem:[#allocation7 + $0x5a4] sm:$0xf]  ;;  %v3161_v13 = vor.u32 %v3910_v0, %v3158_v3  ;;  %v3710_v15 = vld [vmem:[#allocation7 + $0x888] sm:$0xf0]  ;;  %v3904_v19 = vld [vmem:[#allocation7 + $0x3f4] sm:$0xf] }
  0x47   :  { %2053 = vmatpush.bf16.msrb.mxu2 %v2681_v2  ;;  %v3545_v2 = vor.u32 %v4006_v46, %v3542_v47  ;;  %v3353_v16 = vor.u32 %v3958_v4, %v3350_v6  ;;  %v3134_v20 = vld [vmem:[#allocation7 + $0x408] sm:$0xf0]  ;;  %v3952_v21 = vld [vmem:[#allocation7 + $0x574] sm:$0xf]  ;;  %v3994_v37 = vld [vmem:[#allocation7 + $0x6c4] sm:$0xf]  ;;  %v3713_v23 = vor.u32 %v4048_v14, %v3710_v15 }
  0x48   :  { %2071 = vmatpush.bf16.msrb.mxu3 %v2873_v7  ;;  %v4281_v7 = vpack.c.bf16 %v73_v49, %v67_v39  ;;  %v3326_v17 = vld [vmem:[#allocation7 + $0x588] sm:$0xf0]  ;;  %v3137_v24 = vor.u32 %v3904_v19, %v3134_v20  ;;  %v4042_v25 = vld [vmem:[#allocation7 + $0x844] sm:$0xf]  ;;  %v3686_v5 = vld [vmem:[#allocation7 + $0x858] sm:$0xf0] }
  0x49   :  { %2018 = vmatpush.bf16.msrb.mxu0 %v3421_v28  ;;  %v3329_v26 = vor.u32 %v3952_v21, %v3326_v17  ;;  %v3898_v28 = vld [vmem:[#allocation7 + $0x3c4] sm:$0xf]  ;;  %v3110_v29 = vld [vmem:[#allocation7 + $0x3d8] sm:$0xf0]  ;;  %v3689_v34 = vor.u32 %v4042_v25, %v3686_v5  ;;  %v4036_v36 = vld [vmem:[#allocation7 + $0x814] sm:$0xf] }
  0x4a   :  { %2036 = vmatpush.bf16.msrb.mxu1 %v3613_v32  ;;  %v3946_v30 = vld [vmem:[#allocation7 + $0x544] sm:$0xf]  ;;  %v3302_v31 = vld [vmem:[#allocation7 + $0x558] sm:$0xf0]  ;;  %v3988_v32 = vld [vmem:[#allocation7 + $0x694] sm:$0xf]  ;;  %v3113_v35 = vor.u32 %v3898_v28, %v3110_v29 }
  0x4b   :  { %2054 = vmatpush.bf16.msrb.mxu2 %v2657_v18  ;;  %v3521_v18 = vor.u32 %v4000_v8, %v3518_v9  ;;  %v3305_v39 = vor.u32 %v3946_v30, %v3302_v31  ;;  %v3892_v41 = vld [vmem:[#allocation7 + $0x394] sm:$0xf]  ;;  %v3086_v42 = vld [vmem:[#allocation7 + $0x3a8] sm:$0xf0]  ;;  %v3982_v45 = vld [vmem:[#allocation7 + $0x664] sm:$0xf] }
  0x4c   :  { %2072 = vmatpush.bf16.msrb.mxu3 %v2849_v22  ;;  %v3494_v22 = vld [vmem:[#allocation7 + $0x6d8] sm:$0xf0]  ;;  %v3940_v43 = vld [vmem:[#allocation7 + $0x514] sm:$0xf]  ;;  %v3089_v51 = vor.u32 %v3892_v41, %v3086_v42  ;;  %v4030_v52 = vld [vmem:[#allocation7 + $0x7e4] sm:$0xf] }
  0x4d   :  { %2019 = vmatpush.bf16.msrb.mxu0 %v3397_v48  ;;  %v3497_v27 = vor.u32 %v3994_v37, %v3494_v22  ;;  %v3446_v46 = vld [vmem:[#allocation7 + $0x678] sm:$0xf0]  ;;  %v80_v48 = vld [vmem:[#allocation2 + $0x88] sm:$0xff]  ;;  %v3976_v4 = vld [vmem:[#allocation7 + $0x634] sm:$0xf] }
  0x4e   :  { %2037 = vmatpush.bf16.msrb.mxu1 %v3589_v54  ;;  %v79_v47 = vld [vmem:[#allocation2 + $0x80] sm:$0xff]  ;;  %v3449_v60 = vor.u32 %v3982_v45, %v3446_v46  ;;  %v3886_v61 = vld [vmem:[#allocation7 + $0x364] sm:$0xf]  ;;  %v3422_v6 = vld [vmem:[#allocation7 + $0x648] sm:$0xf0]  ;;  %v4294_v8 = vpack.c.bf16 %v80_v48, %v80_v48 }
  0x4f   :  { %2055 = vmatpush.bf16.msrb.mxu2 %v2633_v33  ;;  %v3470_v33 = vld [vmem:[#allocation7 + $0x6a8] sm:$0xf0]  ;;  %v3638_v54 = vld [vmem:[#allocation7 + $0x7f8] sm:$0xf0]  ;;  %v3425_v15 = vor.u32 %v3976_v4, %v3422_v6  ;;  %v3928_v19 = vld [vmem:[#allocation7 + $0x4b4] sm:$0xf] }
  0x50   :  { %2073 = vmatpush.bf16.msrb.mxu3 %v2825_v38  ;;  %2020 = vmatmul.bf16.vlgmr.msrb.gmra.mxu0 %v4281_v7  ;;  %v3662_v38 = vld [vmem:[#allocation7 + $0x828] sm:$0xf0]  ;;  %v3062_v0 = vld [vmem:[#allocation7 + $0x378] sm:$0xf0]  ;;  %v3641_v9 = vor.u32 %v4030_v52, %v3638_v54  ;;  %v3970_v21 = vld [vmem:[#allocation7 + $0x604] sm:$0xf] }
  0x51   :  { %2084 = vmatpush.bf16.msra.mxu0 %v3185_v55  ;;  %2038 = vmatmul.bf16.vlgmr.msrb.gmra.mxu1 %v4286_v11  ;;  %v3665_v49 = vor.u32 %v4036_v36, %v3662_v38  ;;  %v3254_v3 = vld [vmem:[#allocation7 + $0x4f8] sm:$0xf0]  ;;  %v3065_v10 = vor.u32 %v3886_v61, %v3062_v0  ;;  %v3230_v20 = vld [vmem:[#allocation7 + $0x4c8] sm:$0xf0]  ;;  %v3188_v37 = vld [vmem:[#allocation7 + $0x458] sm:$0xf] }
  0x52   :  { %2102 = vmatpush.bf16.msra.mxu1 %v3377_v1  ;;  %2056 = vmatmul.bf16.vlgmr.msrb.gmra.mxu2 %v4242_v53  ;;  %v3934_v1 = vld [vmem:[#allocation7 + $0x4e4] sm:$0xf]  ;;  %v3398_v17 = vld [vmem:[#allocation7 + $0x618] sm:$0xf0]  ;;  %v3920_v22 = vld [vmem:[#allocation7 + $0x46c] sm:$0xf0] }
  0x53   :  { %2120 = vmatpush.bf16.msra.mxu2 %v3569_v40  ;;  %2074 = vmatmul.bf16.vlgmr.msrb.gmra.mxu3 %v4245_v58  ;;  %v3473_v40 = vor.u32 %v3988_v32, %v3470_v33  ;;  %v3257_v14 = vor.u32 %v3934_v1, %v3254_v3  ;;  %v4018_v25 = vld [vmem:[#allocation7 + $0x784] sm:$0xf]  ;;  %v3590_v5 = vld [vmem:[#allocation7 + $0x798] sm:$0xf0]  ;;  %v3401_v28 = vor.u32 %v3970_v21, %v3398_v17  ;;  %v3380_v33 = vld [vmem:[#allocation7 + $0x5d8] sm:$0xf] }
  0x54   :  { %2138 = vmatpush.bf16.msra.mxu3 %v3761_v44  ;;  %v3278_v44 = vld [vmem:[#allocation7 + $0x528] sm:$0xf0]  ;;  %v3014_v29 = vld [vmem:[#allocation7 + $0x318] sm:$0xf0]  ;;  %v3922_v30 = vld [vmem:[#allocation7 + $0x484] sm:$0xf]  ;;  %v3189_v32 = vor.u32 %v3920_v22, %v3188_v37 }
  0x55   :  { %2085 = vmatpush.bf16.msra.mxu0 %v3161_v13  ;;  %v3281_v55 = vor.u32 %v3940_v43, %v3278_v44  ;;  %v3614_v13 = vld [vmem:[#allocation7 + $0x7c8] sm:$0xf0]  ;;  %v3206_v31 = vld [vmem:[#allocation7 + $0x498] sm:$0xf0]  ;;  %v3824_v36 = vld [vmem:[#allocation7 + $0x16c] sm:$0xf0] }
  0x56   :  { %2103 = vmatpush.bf16.msra.mxu1 %v3353_v16  ;;  %v3880_v16 = vld [vmem:[#allocation7 + $0x334] sm:$0xf]  ;;  %v2996_v38 = vld [vmem:[#allocation7 + $0x2d8] sm:$0xf]  ;;  %v3164_v42 = vld [vmem:[#allocation7 + $0x428] sm:$0xf]  ;;  %v3209_v44 = vor.u32 %v3922_v30, %v3206_v31 }
  0x57   :  { %2121 = vmatpush.bf16.msra.mxu2 %v3545_v2  ;;  %v4292_v2 = vpack.c.bf16 %v79_v47, %v79_v47  ;;  %v3914_v43 = vld [vmem:[#allocation7 + $0x43c] sm:$0xf0]  ;;  %v3356_v48 = vld [vmem:[#allocation7 + $0x5a8] sm:$0xf]  ;;  %v3140_v0 = vld [vmem:[#allocation7 + $0x3f8] sm:$0xf] }
  0x58   :  { %2139 = vmatpush.bf16.msra.mxu3 %v3737_v12  ;;  %v4024_v12 = vld [vmem:[#allocation7 + $0x7b4] sm:$0xf]  ;;  %v2780_v52 = vld [vmem:[#allocation7 + $0x128] sm:$0xf]  ;;  %v3818_v54 = vld [vmem:[#allocation7 + $0x13c] sm:$0xf0] }
  0x59   :  { %2086 = vmatpush.bf16.msra.mxu0 %v3137_v24  ;;  %v3866_v61 = vld [vmem:[#allocation7 + $0x2bc] sm:$0xf0]  ;;  %v3908_v1 = vld [vmem:[#allocation7 + $0x40c] sm:$0xf0]  ;;  %v3332_v3 = vld [vmem:[#allocation7 + $0x578] sm:$0xf]  ;;  %v2781_v6 = vor.u32 %v3818_v54, %v2780_v52 }
  0x5a   :  { %2104 = vmatpush.bf16.msra.mxu1 %v3329_v26  ;;  %v3874_v26 = vld [vmem:[#allocation7 + $0x304] sm:$0xf]  ;;  %v3956_v4 = vld [vmem:[#allocation7 + $0x58c] sm:$0xf0]  ;;  %v3950_v21 = vld [vmem:[#allocation7 + $0x55c] sm:$0xf0] }
  0x5b   :  { %2122 = vmatpush.bf16.msra.mxu2 %v3521_v18  ;;  %v3038_v18 = vld [vmem:[#allocation7 + $0x348] sm:$0xf0]  ;;  %v3017_v41 = vor.u32 %v3874_v26, %v3014_v29  ;;  %v2732_v22 = vld [vmem:[#allocation7 + $0xc8] sm:$0xf]  ;;  %v3854_v26 = vld [vmem:[#allocation7 + $0x25c] sm:$0xf0] }
  0x5c   :  { %2140 = vmatpush.bf16.msra.mxu3 %v3713_v23  ;;  %v3617_v23 = vor.u32 %v4024_v12, %v3614_v13  ;;  %v3041_v24 = vor.u32 %v3880_v16, %v3038_v18  ;;  %v3812_v12 = vld [vmem:[#allocation7 + $0x10c] sm:$0xf0]  ;;  %v3141_v13 = vor.u32 %v3908_v1, %v3140_v0  ;;  %v3116_v18 = vld [vmem:[#allocation7 + $0x3c8] sm:$0xf]  ;;  %v3284_v29 = vld [vmem:[#allocation7 + $0x518] sm:$0xf] }
  0x5d   :  { %2087 = vmatpush.bf16.msra.mxu0 %v3113_v35  ;;  %v2804_v35 = vld [vmem:[#allocation7 + $0x158] sm:$0xf]  ;;  %v3860_v16 = vld [vmem:[#allocation7 + $0x28c] sm:$0xf0]  ;;  %v3842_v52 = vld [vmem:[#allocation7 + $0x1fc] sm:$0xf0] }
  0x5e   :  { %2105 = vmatpush.bf16.msra.mxu1 %v3305_v39  ;;  %v3872_v39 = vld [vmem:[#allocation7 + $0x2ec] sm:$0xf0]  ;;  %v2805_v46 = vor.u32 %v3824_v36, %v2804_v35  ;;  %v3044_v54 = vld [vmem:[#allocation7 + $0x338] sm:$0xf] }
  0x5f   :  { %2123 = vmatpush.bf16.msra.mxu2 %v3497_v27  ;;  %v3233_v27 = vor.u32 %v3928_v19, %v3230_v20  ;;  %v2997_v47 = vor.u32 %v3872_v39, %v2996_v38  ;;  %v3902_v19 = vld [vmem:[#allocation7 + $0x3dc] sm:$0xf0]  ;;  %v3308_v20 = vld [vmem:[#allocation7 + $0x548] sm:$0xf]  ;;  %v3944_v30 = vld [vmem:[#allocation7 + $0x52c] sm:$0xf0] }
  0x60   :  { %2141 = vmatpush.bf16.msra.mxu3 %v3689_v34  ;;  %2025 = vmatmul.bf16.gmra.mxu0 %v4292_v2  ;;  %v3968_v34 = vld [vmem:[#allocation7 + $0x5ec] sm:$0xf0]  ;;  %v3285_v36 = vor.u32 %v3944_v30, %v3284_v29  ;;  %v2900_v38 = vld [vmem:[#allocation7 + $0x218] sm:$0xf] }
  0x61   :  { %2088 = vmatpush.bf16.msra.mxu0 %v3089_v51  ;;  %2043 = vmatmul.bf16.gmra.mxu1 %v4294_v8  ;;  %v3381_v45 = vor.u32 %v3968_v34, %v3380_v33  ;;  %v3165_v51 = vor.u32 %v3914_v43, %v3164_v42  ;;  %v2708_v33 = vld [vmem:[#allocation7 + $0x98] sm:$0xf]  ;;  %v3800_v34 = vld [vmem:[#allocation7 + $0xac] sm:$0xf0]  ;;  %v3260_v42 = vld [vmem:[#allocation7 + $0x4e8] sm:$0xf] }
  0x62   :  { %2106 = vmatpush.bf16.msra.mxu1 %v3281_v55  ;;  %2061 = vmatmul.bf16.gmra.mxu2 %v4264_v50  ;;  %v3848_v39 = vld [vmem:[#allocation7 + $0x22c] sm:$0xf0]  ;;  %v3938_v43 = vld [vmem:[#allocation7 + $0x4fc] sm:$0xf0] }
  0x63   :  { %2124 = vmatpush.bf16.msra.mxu2 %v3473_v40  ;;  %2079 = vmatmul.bf16.gmra.mxu3 %v4266_v56  ;;  %v3593_v40 = vor.u32 %v4018_v25, %v3590_v5  ;;  %v3309_v25 = vor.u32 %v3950_v21, %v3308_v20  ;;  %v2924_v5 = vld [vmem:[#allocation7 + $0x248] sm:$0xf]  ;;  %v3869_v20 = vld [vmem:[#allocation7 + $0x2dc] sm:$0xf]  ;;  %v2998_v21 = vld [vmem:[#allocation7 + $0x2f0] sm:$0xf0] }
  0x64   :  { %2142 = vmatpush.bf16.msra.mxu3 %v3665_v49  ;;  %v3962_v49 = vld [vmem:[#allocation7 + $0x5bc] sm:$0xf0]  ;;  %v3001_v30 = vor.u32 %v3869_v20, %v2998_v21 }
  0x65   :  { %2089 = vmatpush.bf16.msra.mxu0 %v3065_v10  ;;  %v3357_v55 = vor.u32 %v3962_v49, %v3356_v48  ;;  %v2756_v10 = vld [vmem:[#allocation7 + $0xf8] sm:$0xf]  ;;  %v3261_v49 = vor.u32 %v3938_v43, %v3260_v42  ;;  %v3548_v42 = vld [vmem:[#allocation7 + $0x728] sm:$0xf] }
  0x66   :  { %2107 = vmatpush.bf16.msra.mxu1 %v3257_v14  ;;  %v3333_v14 = vor.u32 %v3956_v4, %v3332_v3  ;;  %v2757_v17 = vor.u32 %v3812_v12, %v2756_v10  ;;  %v2660_v3 = vld [vmem:[#allocation7 + $0x38] sm:$0xf]  ;;  %v3788_v4 = vld [vmem:[#allocation7 + $0x4c] sm:$0xf0] }
  0x67   :  { %2125 = vmatpush.bf16.msra.mxu2 %v3449_v60  ;;  %v2972_v60 = vld [vmem:[#allocation7 + $0x2a8] sm:$0xf]  ;;  %v3836_v12 = vld [vmem:[#allocation7 + $0x1cc] sm:$0xf0] }
  0x68   :  { %2143 = vmatpush.bf16.msra.mxu3 %v3641_v9  ;;  %v2973_v9 = vor.u32 %v3866_v61, %v2972_v60  ;;  %v3236_v60 = vld [vmem:[#allocation7 + $0x4b8] sm:$0xf]  ;;  %v3932_v61 = vld [vmem:[#allocation7 + $0x4cc] sm:$0xf0] }
  0x69   :  { %2090 = vmatpush.bf16.msra.mxu0 %v3041_v24  ;;  %v3117_v24 = vor.u32 %v3902_v19, %v3116_v18  ;;  %v3237_v10 = vor.u32 %v3932_v61, %v3236_v60  ;;  %v3821_v18 = vld [vmem:[#allocation7 + $0x15c] sm:$0xf]  ;;  %v2806_v19 = vld [vmem:[#allocation7 + $0x170] sm:$0xf0]  ;;  %v3524_v60 = vld [vmem:[#allocation7 + $0x6f8] sm:$0xf] }
  0x6a   :  { %2108 = vmatpush.bf16.msra.mxu1 %v3233_v27  ;;  %v3092_v27 = vld [vmem:[#allocation7 + $0x398] sm:$0xf]  ;;  %v2809_v29 = vor.u32 %v3821_v18, %v2806_v19  ;;  %v4004_v61 = vld [vmem:[#allocation7 + $0x70c] sm:$0xf0]  ;;  %v3692_v18 = vld [vmem:[#allocation7 + $0x848] sm:$0xf] }
  0x6b   :  { %2126 = vmatpush.bf16.msra.mxu2 %v3425_v15  ;;  %v2948_v15 = vld [vmem:[#allocation7 + $0x278] sm:$0xf]  ;;  %v4046_v19 = vld [vmem:[#allocation7 + $0x85c] sm:$0xf0] }
  0x6c   :  { %2144 = vmatpush.bf16.msra.mxu3 %v3617_v23  ;;  %v2949_v37 = vor.u32 %v3860_v16, %v2948_v15  ;;  %v3806_v23 = vld [vmem:[#allocation7 + $0xdc] sm:$0xf0]  ;;  %v3212_v15 = vld [vmem:[#allocation7 + $0x488] sm:$0xf] }
  0x6d   :  { %2091 = vmatpush.bf16.msra.mxu0 %v3017_v41  ;;  %v2733_v31 = vor.u32 %v3806_v23, %v2732_v22  ;;  %v3890_v41 = vld [vmem:[#allocation7 + $0x37c] sm:$0xf0]  ;;  %v2636_v22 = vld [vmem:[#allocation7 + $0x8] sm:$0xf] }
  0x6e   :  { %2109 = vmatpush.bf16.msra.mxu1 %v3209_v44  ;;  %v2709_v44 = vor.u32 %v3800_v34, %v2708_v33  ;;  %v3926_v16 = vld [vmem:[#allocation7 + $0x49c] sm:$0xf0]  ;;  %v3815_v33 = vld [vmem:[#allocation7 + $0x12c] sm:$0xf]  ;;  %v2782_v34 = vld [vmem:[#allocation7 + $0x140] sm:$0xf0] }
  0x6f   :  { %2127 = vmatpush.bf16.msra.mxu2 %v3401_v28  ;;  %v3896_v28 = vld [vmem:[#allocation7 + $0x3ac] sm:$0xf0]  ;;  %v3782_v23 = vld [vmem:[#allocation7 + $0x1c] sm:$0xf0]  ;;  %v2785_v43 = vor.u32 %v3815_v33, %v2782_v34 }
  0x70   :  { %2145 = vmatpush.bf16.msra.mxu3 %v3593_v40  ;;  %2092 = vmatmul.bf16.vlgmr.msra.gmra.mxu0 %v4247_v59  ;;  %v3093_v35 = vor.u32 %v3896_v28, %v3092_v27  ;;  %v3068_v40 = vld [vmem:[#allocation7 + $0x368] sm:$0xf]  ;;  %v3572_v27 = vld [vmem:[#allocation7 + $0x758] sm:$0xf]  ;;  %v4016_v28 = vld [vmem:[#allocation7 + $0x76c] sm:$0xf0] }
  0x71   :  { %2156 = vmatpush.bf16.msrb.mxu0 %v2805_v46  ;;  %2110 = vmatmul.bf16.vlgmr.msra.gmra.mxu1 %v4249_v62  ;;  %v2684_v46 = vld [vmem:[#allocation7 + $0x68] sm:$0xf]  ;;  %v3069_v48 = vor.u32 %v3890_v41, %v3068_v40  ;;  %v3573_v40 = vor.u32 %v4016_v28, %v3572_v27  ;;  %v3668_v27 = vld [vmem:[#allocation7 + $0x818] sm:$0xf]  ;;  %v4040_v28 = vld [vmem:[#allocation7 + $0x82c] sm:$0xf0] }
  0x72   :  { %2174 = vmatpush.bf16.msrb.mxu1 %v2997_v47  ;;  %2128 = vmatmul.bf16.vlgmr.msra.gmra.mxu2 %v4281_v7  ;;  %v3794_v47 = vld [vmem:[#allocation7 + $0x7c] sm:$0xf0]  ;;  %v3669_v34 = vor.u32 %v4040_v28, %v3668_v27  ;;  %v4007_v27 = vld [vmem:[#allocation7 + $0x72c] sm:$0xf]  ;;  %v3550_v28 = vld [vmem:[#allocation7 + $0x740] sm:$0xf0] }
  0x73   :  { %2192 = vmatpush.bf16.msrb.mxu2 %v3189_v32  ;;  %2146 = vmatmul.bf16.vlgmr.msra.gmra.mxu3 %v4286_v11  ;;  %v2925_v32 = vor.u32 %v3854_v26, %v2924_v5  ;;  %v2685_v0 = vor.u32 %v3794_v47, %v2684_v46  ;;  %v3213_v5 = vor.u32 %v3926_v16, %v3212_v15  ;;  %v3830_v26 = vld [vmem:[#allocation7 + $0x19c] sm:$0xf0]  ;;  %v3740_v46 = vld [vmem:[#allocation7 + $0x8a8] sm:$0xf] }
  0x74   :  { %2210 = vmatpush.bf16.msrb.mxu3 %v3381_v45  ;;  %v2901_v45 = vor.u32 %v3848_v39, %v2900_v38  ;;  %v2637_v38 = vor.u32 %v3782_v23, %v2636_v22  ;;  %v4058_v47 = vld [vmem:[#allocation7 + $0x8bc] sm:$0xf0]  ;;  %v3500_v15 = vld [vmem:[#allocation7 + $0x6c8] sm:$0xf]  ;;  %v3693_v23 = vor.u32 %v4046_v19, %v3692_v18  ;;  %v4061_v18 = vld [vmem:[#allocation7 + $0x8dc] sm:$0xf] }
  0x75   :  { %2157 = vmatpush.bf16.msrb.mxu0 %v2781_v6  ;;  %v2852_v6 = vld [vmem:[#allocation7 + $0x1b8] sm:$0xf]  ;;  %v3998_v16 = vld [vmem:[#allocation7 + $0x6dc] sm:$0xf0]  ;;  %v3766_v19 = vld [vmem:[#allocation7 + $0x8f0] sm:$0xf0] }
  0x76   :  { %2175 = vmatpush.bf16.msrb.mxu1 %v2973_v9  ;;  %v3501_v22 = vor.u32 %v3998_v16, %v3500_v15  ;;  %v4013_v15 = vld [vmem:[#allocation7 + $0x75c] sm:$0xf]  ;;  %v3574_v16 = vld [vmem:[#allocation7 + $0x770] sm:$0xf0] }
  0x77   :  { %2193 = vmatpush.bf16.msrb.mxu2 %v3165_v51  ;;  %v2876_v51 = vld [vmem:[#allocation7 + $0x1e8] sm:$0xf] }
  0x78   :  { %2211 = vmatpush.bf16.msrb.mxu3 %v3357_v55  ;;  %v3884_v55 = vld [vmem:[#allocation7 + $0x34c] sm:$0xf0]  ;;  %v2877_v1 = vor.u32 %v3842_v52, %v2876_v51  ;;  %v3741_v52 = vor.u32 %v4058_v47, %v3740_v46 }
  0x79   :  { %2158 = vmatpush.bf16.msrb.mxu0 %v2757_v17  ;;  %v3045_v9 = vor.u32 %v3884_v55, %v3044_v54  ;;  %v2661_v17 = vor.u32 %v3788_v4, %v2660_v3  ;;  %v3857_v54 = vld [vmem:[#allocation7 + $0x27c] sm:$0xf]  ;;  %v2950_v55 = vld [vmem:[#allocation7 + $0x290] sm:$0xf0] }
  0x7a   :  { %2176 = vmatpush.bf16.msrb.mxu1 %v2949_v37  ;;  %v2853_v37 = vor.u32 %v3836_v12, %v2852_v6  ;;  %v2953_v4 = vor.u32 %v3857_v54, %v2950_v55  ;;  %v3803_v6 = vld [vmem:[#allocation7 + $0xcc] sm:$0xf]  ;;  %v3620_v54 = vld [vmem:[#allocation7 + $0x7b8] sm:$0xf]  ;;  %v4028_v55 = vld [vmem:[#allocation7 + $0x7cc] sm:$0xf0] }
  0x7b   :  { %2194 = vmatpush.bf16.msrb.mxu2 %v3141_v13  ;;  %v3020_v13 = vld [vmem:[#allocation7 + $0x308] sm:$0xf] }
  0x7c   :  { %2212 = vmatpush.bf16.msrb.mxu3 %v3333_v14  ;;  %v3878_v14 = vld [vmem:[#allocation7 + $0x31c] sm:$0xf0] }
  0x7d   :  { %2159 = vmatpush.bf16.msrb.mxu0 %v2733_v31  ;;  %v3764_v31 = vld [vmem:[#allocation7 + $0x8d8] sm:$0xf] }
  0x7e   :  { %2177 = vmatpush.bf16.msrb.mxu1 %v2925_v32  ;;  %v4064_v32 = vld [vmem:[#allocation7 + $0x8ec] sm:$0xf0] }
  0x7f   :  { %2195 = vmatpush.bf16.msrb.mxu2 %v3117_v24  ;;  %v2828_v24 = vld [vmem:[#allocation7 + $0x188] sm:$0xf]  ;;  %v3765_v41 = vor.u32 %v4064_v32, %v3764_v31  ;;  %v3791_v31 = vld [vmem:[#allocation7 + $0x6c] sm:$0xf]  ;;  %v2686_v32 = vld [vmem:[#allocation7 + $0x80] sm:$0xf0] }
  0x80   :  { %2213 = vmatpush.bf16.msrb.mxu3 %v3309_v25  ;;  %2097 = vmatmul.bf16.gmra.mxu0 %v4268_v57  ;;  %v3021_v25 = vor.u32 %v3878_v14, %v3020_v13  ;;  %v2829_v39 = vor.u32 %v3830_v26, %v2828_v24  ;;  %v3851_v13 = vld [vmem:[#allocation7 + $0x24c] sm:$0xf]  ;;  %v2926_v14 = vld [vmem:[#allocation7 + $0x260] sm:$0xf0]  ;;  %v3845_v24 = vld [vmem:[#allocation7 + $0x21c] sm:$0xf] }
  0x81   :  { %2160 = vmatpush.bf16.msrb.mxu0 %v2709_v44  ;;  %2115 = vmatmul.bf16.gmra.mxu1 %v4270_v63  ;;  %v2929_v21 = vor.u32 %v3851_v13, %v2926_v14  ;;  %v3992_v26 = vld [vmem:[#allocation7 + $0x6ac] sm:$0xf0]  ;;  %v3596_v13 = vld [vmem:[#allocation7 + $0x788] sm:$0xf]  ;;  %v4022_v14 = vld [vmem:[#allocation7 + $0x79c] sm:$0xf0] }
  0x82   :  { %2178 = vmatpush.bf16.msrb.mxu1 %v2901_v45  ;;  %2133 = vmatmul.bf16.gmra.mxu2 %v4292_v2  ;;  %v4010_v45 = vld [vmem:[#allocation7 + $0x73c] sm:$0xf0] }
  0x83   :  { %2196 = vmatpush.bf16.msrb.mxu2 %v3093_v35  ;;  %2151 = vmatmul.bf16.gmra.mxu3 %v4294_v8  ;;  %v3863_v35 = vld [vmem:[#allocation7 + $0x2ac] sm:$0xf]  ;;  %v3549_v51 = vor.u32 %v4010_v45, %v3548_v42  ;;  %v2689_v42 = vor.u32 %v3791_v31, %v2686_v32  ;;  %v2662_v45 = vld [vmem:[#allocation7 + $0x50] sm:$0xf0]  ;;  %v3742_v32 = vld [vmem:[#allocation7 + $0x8c0] sm:$0xf0] }
  0x84   :  { %2214 = vmatpush.bf16.msrb.mxu3 %v3285_v36  ;;  %v2974_v36 = vld [vmem:[#allocation7 + $0x2c0] sm:$0xf0]  ;;  %v4055_v31 = vld [vmem:[#allocation7 + $0x8ac] sm:$0xf] }
  0x85   :  { %2161 = vmatpush.bf16.msrb.mxu0 %v2685_v0  ;;  %v2977_v44 = vor.u32 %v3863_v35, %v2974_v36  ;;  %v3716_v0 = vld [vmem:[#allocation7 + $0x878] sm:$0xf]  ;;  %v3839_v35 = vld [vmem:[#allocation7 + $0x1ec] sm:$0xf]  ;;  %v2878_v36 = vld [vmem:[#allocation7 + $0x200] sm:$0xf0] }
  0x86   :  { %2179 = vmatpush.bf16.msrb.mxu1 %v2877_v1  ;;  %v4052_v1 = vld [vmem:[#allocation7 + $0x88c] sm:$0xf0] }
  0x87   :  { %2197 = vmatpush.bf16.msrb.mxu2 %v3069_v48  ;;  %v3809_v48 = vld [vmem:[#allocation7 + $0xfc] sm:$0xf]  ;;  %v3717_v12 = vor.u32 %v4052_v1, %v3716_v0  ;;  %v2638_v1 = vld [vmem:[#allocation7 + $0x20] sm:$0xf0] }
  0x88   :  { %2215 = vmatpush.bf16.msrb.mxu3 %v3261_v49  ;;  %v2758_v49 = vld [vmem:[#allocation7 + $0x110] sm:$0xf0] }
  0x89   :  { %2162 = vmatpush.bf16.msrb.mxu0 %v2661_v17  ;;  %v2761_v3 = vor.u32 %v3809_v48, %v2758_v49  ;;  %v3797_v17 = vld [vmem:[#allocation7 + $0x9c] sm:$0xf]  ;;  %v2854_v49 = vld [vmem:[#allocation7 + $0x1d0] sm:$0xf0] }
  0x8a   :  { %2180 = vmatpush.bf16.msrb.mxu1 %v2853_v37  ;;  %v2710_v37 = vld [vmem:[#allocation7 + $0xb0] sm:$0xf0]  ;;  %v3833_v48 = vld [vmem:[#allocation7 + $0x1bc] sm:$0xf] }
  0x8b   :  { %2198 = vmatpush.bf16.msrb.mxu2 %v3045_v9  ;;  %v2734_v9 = vld [vmem:[#allocation7 + $0xe0] sm:$0xf0]  ;;  %v2857_v0 = vor.u32 %v3833_v48, %v2854_v49  ;;  %v3142_v48 = vld [vmem:[#allocation7 + $0x410] sm:$0xf0]  ;;  %v3953_v49 = vld [vmem:[#allocation7 + $0x57c] sm:$0xf] }
  0x8c   :  { %2216 = vmatpush.bf16.msrb.mxu3 %v3237_v10  ;;  %v3525_v10 = vor.u32 %v4004_v61, %v3524_v60  ;;  %v2737_v20 = vor.u32 %v3803_v6, %v2734_v9  ;;  %v3779_v60 = vld [vmem:[#allocation7 + $0xc] sm:$0xf]  ;;  %v3621_v9 = vor.u32 %v4028_v55, %v3620_v54 }
  0x8d   :  { %2163 = vmatpush.bf16.msrb.mxu0 %v2637_v38  ;;  %v3452_v38 = vld [vmem:[#allocation7 + $0x668] sm:$0xf] }
  0x8e   :  { %2181 = vmatpush.bf16.msrb.mxu1 %v2829_v39  ;;  %v3986_v39 = vld [vmem:[#allocation7 + $0x67c] sm:$0xf0] }
  0x8f   :  { %2199 = vmatpush.bf16.msrb.mxu2 %v3021_v25  ;;  %v2902_v25 = vld [vmem:[#allocation7 + $0x230] sm:$0xf0]  ;;  %v3453_v46 = vor.u32 %v3986_v39, %v3452_v38  ;;  %v3553_v38 = vor.u32 %v4007_v27, %v3550_v28  ;;  %v3745_v39 = vor.u32 %v4055_v31, %v3742_v32  ;;  %v3941_v28 = vld [vmem:[#allocation7 + $0x51c] sm:$0xf] }
  0x90   :  { %2217 = vmatpush.bf16.msrb.mxu3 %v3213_v5  ;;  %2164 = vmatmul.bf16.vlgmr.msrb.gmra.mxu0 %v4242_v53  ;;  %v3476_v5 = vld [vmem:[#allocation7 + $0x698] sm:$0xf]  ;;  %v3094_v27 = vld [vmem:[#allocation7 + $0x3b0] sm:$0xf0] }
  0x91   :  { %2228 = vmatpush.bf16.msra.mxu0 %v3573_v40  ;;  %2182 = vmatmul.bf16.vlgmr.msrb.gmra.mxu1 %v4245_v58  ;;  %v3477_v33 = vor.u32 %v3992_v26, %v3476_v5  ;;  %v3644_v40 = vld [vmem:[#allocation7 + $0x7e8] sm:$0xf]  ;;  %v3577_v5 = vor.u32 %v4013_v15, %v3574_v16  ;;  %v3769_v26 = vor.u32 %v4061_v18, %v3766_v19 }
  0x92   :  { %2246 = vmatpush.bf16.msra.mxu1 %v3765_v41  ;;  %2200 = vmatmul.bf16.vlgmr.msrb.gmra.mxu2 %v4247_v59  ;;  %v4034_v41 = vld [vmem:[#allocation7 + $0x7fc] sm:$0xf0]  ;;  %v4326_v15 = vld [vmem:[#allocation5 + $0x1] ss:$4 sm:$0x3f] }
  0x93   :  { %2264 = vmatpush.bf16.msra.mxu2 %v2809_v29  ;;  %2218 = vmatmul.bf16.vlgmr.msrb.gmra.mxu3 %v4249_v62  ;;  %v2713_v29 = vor.u32 %v3797_v17, %v2710_v37  ;;  %v3645_v47 = vor.u32 %v4034_v41, %v3644_v40  ;;  %v3190_v37 = vld [vmem:[#allocation7 + $0x470] sm:$0xf0]  ;;  %v4341_v31 = vperm.slane %v4326_v15, 0 }
  0x94   :  { %2282 = vmatpush.bf16.msra.mxu3 %v3001_v30  ;;  %v2905_v30 = vor.u32 %v3845_v24, %v2902_v25  ;;  %v3597_v25 = vor.u32 %v4022_v14, %v3596_v13  ;;  %v3947_v13 = vld [vmem:[#allocation7 + $0x54c] sm:$0xf]  ;;  %v3310_v14 = vld [vmem:[#allocation7 + $0x560] sm:$0xf0] }
  0x95   :  { %2229 = vmatpush.bf16.msra.mxu0 %v3549_v51  ;;  %v3428_v51 = vld [vmem:[#allocation7 + $0x638] sm:$0xf] }
  0x96   :  { %2247 = vmatpush.bf16.msra.mxu1 %v3741_v52  ;;  %v3980_v52 = vld [vmem:[#allocation7 + $0x64c] sm:$0xf0] }
  0x97   :  { %2265 = vmatpush.bf16.msra.mxu2 %v2785_v43  ;;  %v2881_v43 = vor.u32 %v3839_v35, %v2878_v36  ;;  %v3429_v6 = vor.u32 %v3980_v52, %v3428_v51  ;;  %v3959_v35 = vld [vmem:[#allocation7 + $0x5ac] sm:$0xf]  ;;  %v3358_v36 = vld [vmem:[#allocation7 + $0x5c0] sm:$0xf0]  ;;  %v3334_v51 = vld [vmem:[#allocation7 + $0x590] sm:$0xf0] }
  0x98   :  { %2283 = vmatpush.bf16.msra.mxu3 %v2977_v44  ;;  %v3785_v44 = vld [vmem:[#allocation7 + $0x3c] sm:$0xf]  ;;  %v3361_v41 = vor.u32 %v3959_v35, %v3358_v36  ;;  %v3983_v36 = vld [vmem:[#allocation7 + $0x66c] sm:$0xf] }
  0x99   :  { %2230 = vmatpush.bf16.msra.mxu0 %v3525_v10  ;;  %v2665_v61 = vor.u32 %v3785_v44, %v2662_v45  ;;  %v3404_v10 = vld [vmem:[#allocation7 + $0x608] sm:$0xf]  ;;  %v4049_v44 = vld [vmem:[#allocation7 + $0x87c] sm:$0xf]  ;;  %v3718_v45 = vld [vmem:[#allocation7 + $0x890] sm:$0xf0] }
  0x9a   :  { %2248 = vmatpush.bf16.msra.mxu1 %v3717_v12  ;;  %v3974_v12 = vld [vmem:[#allocation7 + $0x61c] sm:$0xf0]  ;;  %v4328_v16 = vld [vmem:[#allocation5 + $0x2] ss:$4 sm:$0x3f] }
  0x9b   :  { %2266 = vmatpush.bf16.msra.mxu2 %v2761_v3  ;;  %v3827_v3 = vld [vmem:[#allocation7 + $0x18c] sm:$0xf]  ;;  %v3405_v24 = vor.u32 %v3974_v12, %v3404_v10  ;;  %v4322_v10 = vpop.permute.xlu0 %399  ;;  %v3118_v12 = vld [vmem:[#allocation7 + $0x3e0] sm:$0xf0] }
  0x9c   :  { %2284 = vmatpush.bf16.msra.mxu3 %v2953_v4  ;;  %v2830_v4 = vld [vmem:[#allocation7 + $0x1a0] sm:$0xf0]  ;;  %v4318_v52 = vpop.permute.xlu1 %405  ;;  %vm407_vm6 = vcmp.eq.s32.totalorder %v4322_v10, 1 }
  0x9d   :  { %2231 = vmatpush.bf16.msra.mxu0 %v3501_v22  ;;  %v2833_v17 = vor.u32 %v3827_v3, %v2830_v4  ;;  %v3965_v22 = vld [vmem:[#allocation7 + $0x5dc] sm:$0xf]  ;;  %v3337_v3 = vor.u32 %v3953_v49, %v3334_v51  ;;  %v4043_v4 = vld [vmem:[#allocation7 + $0x84c] sm:$0xf]  ;;  %vm409_vm10 = vcmp.eq.s32.totalorder %v4318_v52, 1 }
  0x9e   :  { %2249 = vmatpush.bf16.msra.mxu1 %v3693_v23  ;;  %v3382_v23 = vld [vmem:[#allocation7 + $0x5f0] sm:$0xf0] }
  0x9f   :  { %2267 = vmatpush.bf16.msra.mxu2 %v2737_v20  ;;  %v3917_v20 = vld [vmem:[#allocation7 + $0x45c] sm:$0xf] }
  0xa0   :  { %2285 = vmatpush.bf16.msra.mxu3 %v2929_v21  ;;  %2169 = vmatmul.bf16.gmra.mxu0 %v4264_v50  ;;  %v2641_v21 = vor.u32 %v3779_v60, %v2638_v1  ;;  %v3721_v60 = vor.u32 %v4049_v44, %v3718_v45  ;;  %v3887_v44 = vld [vmem:[#allocation7 + $0x36c] sm:$0xf]  ;;  %v3070_v45 = vld [vmem:[#allocation7 + $0x380] sm:$0xf0] }
  0xa1   :  { %2232 = vmatpush.bf16.msra.mxu0 %v3477_v33  ;;  %2187 = vmatmul.bf16.gmra.mxu1 %v4266_v56  ;;  %v3911_v33 = vld [vmem:[#allocation7 + $0x42c] sm:$0xf] }
  0xa2   :  { %2250 = vmatpush.bf16.msra.mxu1 %v3669_v34  ;;  %2205 = vmatmul.bf16.gmra.mxu2 %v4268_v57  ;;  %v3166_v34 = vld [vmem:[#allocation7 + $0x440] sm:$0xf0] }
  0xa3   :  { %2268 = vmatpush.bf16.msra.mxu2 %v2713_v29  ;;  %2223 = vmatmul.bf16.gmra.mxu3 %v4270_v63  ;;  %v3193_v29 = vor.u32 %v3917_v20, %v3190_v37  ;;  %v3169_v40 = vor.u32 %v3911_v33, %v3166_v34  ;;  %v3989_v20 = vld [vmem:[#allocation7 + $0x69c] sm:$0xf]  ;;  %v4347_v33 = vperm.slane %v4328_v16, 0 }
  0xa4   :  { %2286 = vmatpush.bf16.msra.mxu3 %v2905_v30  ;;  %v3385_v30 = vor.u32 %v3965_v22, %v3382_v23  ;;  %v3313_v22 = vor.u32 %v3947_v13, %v3310_v14  ;;  %v4037_v23 = vld [vmem:[#allocation7 + $0x81c] sm:$0xf] }
  0xa5   :  { %2233 = vmatpush.bf16.msra.mxu0 %v3453_v46  ;;  %v3905_v46 = vld [vmem:[#allocation7 + $0x3fc] sm:$0xf]  ;;  %v436_v51 = vsel %vm407_vm6, %v4341_v31, %v4347_v33 }
  0xa6   :  { %2251 = vmatpush.bf16.msra.mxu1 %v3645_v47  ;;  %v3145_v1 = vor.u32 %v3905_v46, %v3142_v48  ;;  %v3935_v46 = vld [vmem:[#allocation7 + $0x4ec] sm:$0xf]  ;;  %v3262_v48 = vld [vmem:[#allocation7 + $0x500] sm:$0xf0]  ;;  %v3881_v13 = vld [vmem:[#allocation7 + $0x33c] sm:$0xf] }
  0xa7   :  { %2269 = vmatpush.bf16.msra.mxu2 %v2689_v42  ;;  %v4001_v42 = vld [vmem:[#allocation7 + $0x6fc] sm:$0xf] }
  0xa8   :  { %2287 = vmatpush.bf16.msra.mxu3 %v2881_v43  ;;  %v3526_v43 = vld [vmem:[#allocation7 + $0x710] sm:$0xf0] }
  0xa9   :  { %2234 = vmatpush.bf16.msra.mxu0 %v3429_v6  ;;  %v3529_v55 = vor.u32 %v4001_v42, %v3526_v43  ;;  %v3694_v6 = vld [vmem:[#allocation7 + $0x860] sm:$0xf0]  ;;  %v4031_v42 = vld [vmem:[#allocation7 + $0x7ec] sm:$0xf] }
  0xaa   :  { %2252 = vmatpush.bf16.msra.mxu1 %v3621_v9  ;;  %v3899_v9 = vld [vmem:[#allocation7 + $0x3cc] sm:$0xf]  ;;  %v3697_v19 = vor.u32 %v4043_v4, %v3694_v6  ;;  %v3646_v43 = vld [vmem:[#allocation7 + $0x800] sm:$0xf0]  ;;  %v3073_v4 = vor.u32 %v3887_v44, %v3070_v45  ;;  %v3265_v6 = vor.u32 %v3935_v46, %v3262_v48  ;;  %v3196_v44 = vld [vmem:[#allocation7 + $0x460] sm:$0xf] }
  0xab   :  { %2270 = vmatpush.bf16.msra.mxu2 %v2665_v61  ;;  %v3995_v61 = vld [vmem:[#allocation7 + $0x6cc] sm:$0xf]  ;;  %v3121_v37 = vor.u32 %v3899_v9, %v3118_v12  ;;  %v4025_v9 = vld [vmem:[#allocation7 + $0x7bc] sm:$0xf]  ;;  %v3622_v12 = vld [vmem:[#allocation7 + $0x7d0] sm:$0xf0] }
  0xac   :  { %2288 = vmatpush.bf16.msra.mxu3 %v2857_v0  ;;  %v3502_v0 = vld [vmem:[#allocation7 + $0x6e0] sm:$0xf0]  ;;  %v3921_v45 = vld [vmem:[#allocation7 + $0x474] sm:$0xf0]  ;;  %v3388_v46 = vld [vmem:[#allocation7 + $0x5e0] sm:$0xf] }
  0xad   :  { %2235 = vmatpush.bf16.msra.mxu0 %v3405_v24  ;;  %v4316_v47 = vpop.f32.mrf.mxu0  ;;  %v3505_v18 = vor.u32 %v3995_v61, %v3502_v0  ;;  %v3670_v24 = vld [vmem:[#allocation7 + $0x830] sm:$0xf0]  ;;  %v3649_v61 = vor.u32 %v4031_v42, %v3646_v43  ;;  %v3977_v0 = vld [vmem:[#allocation7 + $0x63c] sm:$0xf]  ;;  %v3214_v43 = vld [vmem:[#allocation7 + $0x4a0] sm:$0xf0] }
  0xae   :  { %2253 = vmatpush.bf16.msra.mxu1 %v3597_v25  ;;  %v4320_v54 = vpop.f32.mrf.mxu1  ;;  %v3893_v25 = vld [vmem:[#allocation7 + $0x39c] sm:$0xf]  ;;  %v3673_v35 = vor.u32 %v4037_v23, %v3670_v24  ;;  %v3971_v23 = vld [vmem:[#allocation7 + $0x60c] sm:$0xf]  ;;  %v3969_v48 = vld [vmem:[#allocation7 + $0x5f4] sm:$0xf0] }
  0xaf   :  { %2271 = vmatpush.bf16.msra.mxu2 %v2641_v21  ;;  %v3478_v21 = vld [vmem:[#allocation7 + $0x6b0] sm:$0xf0] }
  0xb0   :  { %2289 = vmatpush.bf16.msra.mxu3 %v2833_v17  ;;  %2236 = vmatmul.bf16.vlgmr.msra.gmra.mxu0 %v4281_v7  ;;  %v3481_v34 = vor.u32 %v3989_v20, %v3478_v21  ;;  %v3929_v20 = vld [vmem:[#allocation7 + $0x4bc] sm:$0xf]  ;;  %v3238_v21 = vld [vmem:[#allocation7 + $0x4d0] sm:$0xf0] }
  0xb1   :  { %2300 = vmatpush.bf16.msrb.mxu0 %v3193_v29  ;;  %2254 = vmatmul.bf16.vlgmr.msra.gmra.mxu1 %v4286_v11  ;;  %v3286_v29 = vld [vmem:[#allocation7 + $0x530] sm:$0xf0] }
  0xb2   :  { %2318 = vmatpush.bf16.msrb.mxu1 %v3385_v30  ;;  %2272 = vmatmul.bf16.vlgmr.msra.gmra.mxu2 %v4242_v53  ;;  %v4338_v30 = vld [vmem:[#allocation5] ss:$4 sm:$0x3f] }
  0xb3   :  { %2336 = vmatpush.bf16.msrb.mxu2 %v3577_v5  ;;  %2290 = vmatmul.bf16.vlgmr.msra.gmra.mxu3 %v4245_v58  ;;  %v4352_v49 = vperm.slane %v4338_v30, 0 }
  0xb4   :  { %2354 = vmatpush.bf16.msrb.mxu3 %v3769_v26 }
  0xb5   :  { %2301 = vmatpush.bf16.msrb.mxu0 %v3169_v40  ;;  %v4332_v17 = vpop.f32.mrf.mxu2  ;;  %v4336_v26 = vpop.f32.mrf.mxu0  ;;  %v3097_v40 = vor.u32 %v3893_v25, %v3094_v27  ;;  %v3625_v25 = vor.u32 %v4025_v9, %v3622_v12  ;;  %v3406_v27 = vld [vmem:[#allocation7 + $0x620] sm:$0xf0] }
  0xb6   :  { %2319 = vmatpush.bf16.msrb.mxu1 %v3361_v41  ;;  %v4334_v5 = vpop.f32.mrf.mxu3  ;;  %v4343_v32 = vpop.f32.mrf.mxu1  ;;  %v3289_v41 = vor.u32 %v3941_v28, %v3286_v29  ;;  %v4019_v28 = vld [vmem:[#allocation7 + $0x78c] sm:$0xf]  ;;  %v3598_v29 = vld [vmem:[#allocation7 + $0x7a0] sm:$0xf0] }
  0xb7   :  { %2337 = vmatpush.bf16.msrb.mxu2 %v3553_v38  ;;  %v3454_v38 = vld [vmem:[#allocation7 + $0x680] sm:$0xf0] }
  0xb8   :  { %2355 = vmatpush.bf16.msrb.mxu3 %v3745_v39  ;;  %v4349_v39 = vpop.permute.xlu1 %458 }
  0xb9   :  { %2302 = vmatpush.bf16.msrb.mxu0 %v3145_v1  ;;  %vm466_vm7 = vcmp.eq.s32.totalorder %v4349_v39, 1  ;;  %v3430_v1 = vld [vmem:[#allocation7 + $0x650] sm:$0xf0] }
  0xba   :  { %2320 = vmatpush.bf16.msrb.mxu1 %v3337_v3  ;;  %v3433_v24 = vor.u32 %v3977_v0, %v3430_v1  ;;  %v3825_v0 = vld [vmem:[#allocation7 + $0x174] sm:$0xf0] }
  0xbb   :  { %2338 = vmatpush.bf16.msrb.mxu2 %v3529_v55  ;;  %v4359_v55 = vpop.permute.xlu0 %402  ;;  %v3873_v1 = vld [vmem:[#allocation7 + $0x2f4] sm:$0xf0] }
  0xbc   :  { %2356 = vmatpush.bf16.msrb.mxu3 %v3721_v60  ;;  %v3457_v60 = vor.u32 %v3983_v36, %v3454_v38  ;;  %vm408_vm8 = vcmp.eq.s32.totalorder %v4359_v55, 1  ;;  %v3241_v36 = vor.u32 %v3929_v20, %v3238_v21  ;;  %v3875_v38 = vld [vmem:[#allocation7 + $0x30c] sm:$0xf]  ;;  %v3197_v21 = vor.u32 %v3921_v45, %v3196_v44 }
  0xbd   :  { %2303 = vmatpush.bf16.msrb.mxu0 %v3121_v37  ;;  %v4361_v3 = vpop.f32.mrf.mxu2  ;;  %v482_v37 = vsel %vm466_vm7, %v4352_v49, %v436_v51  ;;  %v2812_v51 = vld [vmem:[#allocation7 + $0x160] sm:$0xf] }
  0xbe   :  { %2321 = vmatpush.bf16.msrb.mxu1 %v3313_v22  ;;  %v4363_v14 = vpop.f32.mrf.mxu3  ;;  %v4371_v22 = vpop.f32.mrf.mxu1  ;;  %v1950_v42 = vadd.f32 %v4316_v47, %v482_v37  ;;  %v3004_v47 = vld [vmem:[#allocation7 + $0x2e0] sm:$0xf]  ;;  %v3389_v37 = vor.u32 %v3969_v48, %v3388_v46 }
  0xbf   :  { %2339 = vmatpush.bf16.msrb.mxu2 %v3505_v18  ;;  %v4365_v18 = vpop.f32.mrf.mxu0 }
  0xc0   :  { %2357 = vmatpush.bf16.msrb.mxu3 %v3697_v19  ;;  %v3046_v19 = vld [vmem:[#allocation7 + $0x350] sm:$0xf0]  ;;  %2241 = vmatmul.bf16.gmra.mxu0 %v4292_v2  ;;  %v1968_v12 = vadd.f32 %v4320_v54, %v1950_v42  ;;  %v3819_v54 = vld [vmem:[#allocation7 + $0x144] sm:$0xf0] }
  0xc1   :  { %2304 = vmatpush.bf16.msrb.mxu0 %v3097_v40  ;;  %v3022_v40 = vld [vmem:[#allocation7 + $0x320] sm:$0xf0]  ;;  %2259 = vmatmul.bf16.gmra.mxu1 %v4294_v8 }
  0xc2   :  { %2322 = vmatpush.bf16.msrb.mxu1 %v3289_v41  ;;  %v3923_v41 = vld [vmem:[#allocation7 + $0x48c] sm:$0xf]  ;;  %2277 = vmatmul.bf16.gmra.mxu2 %v4264_v50 }
  0xc3   :  { %2340 = vmatpush.bf16.msrb.mxu2 %v3481_v34  ;;  %v4373_v34 = vpop.permute.xlu2 %461  ;;  %2295 = vmatmul.bf16.gmra.mxu3 %v4266_v56  ;;  %v3217_v9 = vor.u32 %v3923_v41, %v3214_v43  ;;  %v1986_v43 = vadd.f32 %v4332_v17, %v1968_v12 }
  0xc4   :  { %2358 = vmatpush.bf16.msrb.mxu3 %v3673_v35  ;;  %v3049_v35 = vor.u32 %v3881_v13, %v3046_v19  ;;  %vm467_vm9 = vcmp.eq.s32.totalorder %v4373_v34, 1  ;;  %v442_v13 = vsel %vm408_vm8, %v4341_v31, %v4347_v33 }
  0xc5   :  { %2305 = vmatpush.bf16.msrb.mxu0 %v3073_v4  ;;  %v4381_v4 = vpop.f32.mrf.mxu2  ;;  %v488_v41 = vsel %vm467_vm9, %v4352_v49, %v442_v13  ;;  %v3813_v13 = vld [vmem:[#allocation7 + $0x114] sm:$0xf0] }
  0xc6   :  { %2323 = vmatpush.bf16.msrb.mxu1 %v3265_v6  ;;  %v3025_v6 = vor.u32 %v3875_v38, %v3022_v40  ;;  %v4388_v19 = vpop.f32.mrf.mxu3  ;;  %v2980_v38 = vld [vmem:[#allocation7 + $0x2b0] sm:$0xf]  ;;  %v3867_v40 = vld [vmem:[#allocation7 + $0x2c4] sm:$0xf0] }
  0xc7   :  { %2341 = vmatpush.bf16.msrb.mxu2 %v3457_v60  ;;  %v3409_v60 = vor.u32 %v3971_v23, %v3406_v27  ;;  %v1956_v20 = vpop.f32.mrf.mxu0  ;;  %v3172_v23 = vld [vmem:[#allocation7 + $0x430] sm:$0xf]  ;;  %v2813_v27 = vor.u32 %v3825_v0, %v2812_v51  ;;  %v2981_v48 = vor.u32 %v3867_v40, %v2980_v38  ;;  %v1952_v51 = vadd.f32 %v4336_v26, %v488_v41  ;;  %v3909_v0 = vld [vmem:[#allocation7 + $0x414] sm:$0xf0]  ;;  %v2956_v26 = vld [vmem:[#allocation7 + $0x280] sm:$0xf] }
  0xc8   :  { %2359 = vmatpush.bf16.msrb.mxu3 %v3649_v61  ;;  %v3601_v61 = vor.u32 %v4019_v28, %v3598_v29  ;;  %v3005_v28 = vor.u32 %v3873_v1, %v3004_v47  ;;  %v3364_v29 = vld [vmem:[#allocation7 + $0x5b0] sm:$0xf]  ;;  %v3340_v47 = vld [vmem:[#allocation7 + $0x580] sm:$0xf]  ;;  %v3957_v1 = vld [vmem:[#allocation7 + $0x594] sm:$0xf0] }
  0xc9   :  { %2306 = vmatpush.bf16.msrb.mxu0 %v3049_v35  ;;  %v3963_v35 = vld [vmem:[#allocation7 + $0x5c4] sm:$0xf0]  ;;  %v3861_v20 = vld [vmem:[#allocation7 + $0x294] sm:$0xf0]  ;;  %v2932_v41 = vld [vmem:[#allocation7 + $0x250] sm:$0xf] }
  0xca   :  { %2324 = vmatpush.bf16.msrb.mxu1 %v3241_v36  ;;  %v2788_v36 = vld [vmem:[#allocation7 + $0x130] sm:$0xf]  ;;  %v3365_v45 = vor.u32 %v3963_v35, %v3364_v29  ;;  %v2957_v29 = vor.u32 %v3861_v20, %v2956_v26 }
  0xcb   :  { %2342 = vmatpush.bf16.msrb.mxu2 %v3433_v24  ;;  %v3915_v24 = vld [vmem:[#allocation7 + $0x444] sm:$0xf0]  ;;  %v4394_v42 = vpop.permute.xlu2 %464  ;;  %v2789_v46 = vor.u32 %v3819_v54, %v2788_v36  ;;  %v3316_v35 = vld [vmem:[#allocation7 + $0x550] sm:$0xf] }
  0xcc   :  { %2360 = vmatpush.bf16.msrb.mxu3 %v3625_v25  ;;  %v1974_v25 = vpop.f32.mrf.mxu1  ;;  %v3173_v44 = vor.u32 %v3915_v24, %v3172_v23  ;;  %vm468_vm11 = vcmp.eq.s32.totalorder %v4394_v42, 1  ;;  %v3951_v36 = vld [vmem:[#allocation7 + $0x564] sm:$0xf0]  ;;  %v2740_v54 = vld [vmem:[#allocation7 + $0xd0] sm:$0xf] }
  0xcd   :  { %2307 = vmatpush.bf16.msrb.mxu0 %v3025_v6  ;;  %v1992_v17 = vpop.f32.mrf.mxu2  ;;  %v2764_v6 = vld [vmem:[#allocation7 + $0x100] sm:$0xf]  ;;  %v3341_v25 = vor.u32 %v3957_v1, %v3340_v47 }
  0xce   :  { %2325 = vmatpush.bf16.msrb.mxu1 %v3217_v9  ;;  %v2004_v9 = vadd.f32 %v4334_v5, %v1986_v43  ;;  %v2010_v12 = vpop.f32.mrf.mxu3  ;;  %v3124_v5 = vld [vmem:[#allocation7 + $0x3d0] sm:$0xf]  ;;  %v3855_v43 = vld [vmem:[#allocation7 + $0x264] sm:$0xf0] }
  0xcf   :  { %2343 = vmatpush.bf16.msrb.mxu2 %v3409_v60  ;;  %v448_v60 = vsel %vm409_vm10, %v4341_v31, %v4347_v33  ;;  %v1970_v31 = vadd.f32 %v4343_v32, %v1952_v51  ;;  %v3807_v32 = vld [vmem:[#allocation7 + $0xe4] sm:$0xf0]  ;;  %v2933_v51 = vor.u32 %v3855_v43, %v2932_v41  ;;  %v3849_v12 = vld [vmem:[#allocation7 + $0x234] sm:$0xf0]  ;;  %v3244_v43 = vld [vmem:[#allocation7 + $0x4c0] sm:$0xf] }
  0xd0   :  { %2361 = vmatpush.bf16.msrb.mxu3 %v3601_v61  ;;  %v3148_v61 = vld [vmem:[#allocation7 + $0x400] sm:$0xf]  ;;  %2308 = vmatmul.bf16.vlgmr.msrb.gmra.mxu0 %v4247_v59 }
  0xd1   :  { %2372 = vmatpush.bf16.msra.mxu0 %v2813_v27  ;;  %v3149_v24 = vor.u32 %v3909_v0, %v3148_v61  ;;  %v3903_v27 = vld [vmem:[#allocation7 + $0x3e4] sm:$0xf0]  ;;  %v1988_v38 = vadd.f32 %v4361_v3, %v1970_v31  ;;  %2326 = vmatmul.bf16.vlgmr.msrb.gmra.mxu1 %v4249_v62  ;;  %v3100_v3 = vld [vmem:[#allocation7 + $0x3a0] sm:$0xf]  ;;  %v3945_v61 = vld [vmem:[#allocation7 + $0x534] sm:$0xf0] }
  0xd2   :  { %2390 = vmatpush.bf16.msra.mxu1 %v3005_v28  ;;  %v2765_v28 = vor.u32 %v3813_v13, %v2764_v6  ;;  %2344 = vmatmul.bf16.vlgmr.msrb.gmra.mxu2 %v4281_v7  ;;  %v2716_v0 = vld [vmem:[#allocation7 + $0xa0] sm:$0xf]  ;;  %v3801_v6 = vld [vmem:[#allocation7 + $0xb4] sm:$0xf0]  ;;  %v3076_v31 = vld [vmem:[#allocation7 + $0x370] sm:$0xf] }
  0xd3   :  { %2408 = vmatpush.bf16.msra.mxu2 %v3197_v21  ;;  %v494_v21 = vsel %vm468_vm11, %v4352_v49, %v448_v60  ;;  %2362 = vmatmul.bf16.vlgmr.msrb.gmra.mxu3 %v4286_v11  ;;  %v3292_v60 = vld [vmem:[#allocation7 + $0x520] sm:$0xf]  ;;  %v2006_v17 = vadd.f32 %v4363_v14, %v1988_v38 }
  0xd4   :  { %2426 = vmatpush.bf16.msra.mxu3 %v3389_v37  ;;  %v2021_v37 = vpop.f32.mrf.mxu0  ;;  %v2039_v23 = vpop.f32.mrf.mxu1  ;;  %v1955_v49 = vadd.f32 %v4365_v18, %v494_v21 }
  0xd5   :  { %2373 = vmatpush.bf16.msra.mxu0 %v2789_v46  ;;  %v2022_v33 = vadd.f32 %v2021_v37, %v2004_v9  ;;  %v3897_v46 = vld [vmem:[#allocation7 + $0x3b4] sm:$0xf0]  ;;  %v4414_v18 = vpop.f32.mrf.mxu2  ;;  %v2908_v9 = vld [vmem:[#allocation7 + $0x220] sm:$0xf]  ;;  %v3293_v37 = vor.u32 %v3945_v61, %v3292_v60  ;;  %v4430_v60 = vperm.slane %v4328_v16, 1  ;;  %v4433_v61 = vperm.slane %v4338_v30, 1 }
  0xd6   :  { %2391 = vmatpush.bf16.msra.mxu1 %v2981_v48  ;;  %v2741_v48 = vor.u32 %v3807_v32, %v2740_v54  ;;  %v1973_v47 = vadd.f32 %v4371_v22, %v1955_v49  ;;  %v4418_v1 = vpop.f32.mrf.mxu3  ;;  %v3101_v21 = vor.u32 %v3897_v46, %v3100_v3  ;;  %v2909_v14 = vor.u32 %v3849_v12, %v2908_v9  ;;  %v3939_v22 = vld [vmem:[#allocation7 + $0x504] sm:$0xf0]  ;;  %v3052_v49 = vld [vmem:[#allocation7 + $0x340] sm:$0xf]  ;;  %v3789_v46 = vld [vmem:[#allocation7 + $0x54] sm:$0xf0] }
  0xd7   :  { %2409 = vmatpush.bf16.msra.mxu2 %v3173_v44  ;;  %v2040_v40 = vadd.f32 %v2039_v23, %v2022_v33  ;;  %v3125_v44 = vor.u32 %v3903_v27, %v3124_v5  ;;  %v3891_v33 = vld [vmem:[#allocation7 + $0x384] sm:$0xf0]  ;;  %v2717_v23 = vor.u32 %v3801_v6, %v2716_v0 }
  0xd8   :  { %2427 = vmatpush.bf16.msra.mxu3 %v3365_v45  ;;  %v3317_v45 = vor.u32 %v3951_v36, %v3316_v35  ;;  %v1991_v5 = vadd.f32 %v4381_v4, %v1973_v47  ;;  %v3843_v35 = vld [vmem:[#allocation7 + $0x204] sm:$0xf0]  ;;  %v4422_v36 = vperm.slane %v4326_v15, 1  ;;  %v3077_v54 = vor.u32 %v3891_v33, %v3076_v31  ;;  %v2836_v31 = vld [vmem:[#allocation7 + $0x190] sm:$0xf] }
  0xd9   :  { %2588 = vst [vmem:[#allocation8] sm:$0xff] %v2040_v40  ;;  %2374 = vmatpush.bf16.msra.mxu0 %v2765_v28  ;;  %v3795_v28 = vld [vmem:[#allocation7 + $0x84] sm:$0xf0]  ;;  %v3885_v40 = vld [vmem:[#allocation7 + $0x354] sm:$0xf0] }
  0xda   :  { %2392 = vmatpush.bf16.msra.mxu1 %v2957_v29  ;;  %v2884_v29 = vld [vmem:[#allocation7 + $0x1f0] sm:$0xf]  ;;  %v2009_v3 = vadd.f32 %v4388_v19, %v1991_v5  ;;  %v3879_v47 = vld [vmem:[#allocation7 + $0x324] sm:$0xf0]  ;;  %v3053_v12 = vor.u32 %v3885_v40, %v3052_v49  ;;  %v4017_v5 = vld [vmem:[#allocation7 + $0x774] sm:$0xf0] }
  0xdb   :  { %2410 = vmatpush.bf16.msra.mxu2 %v3149_v24  ;;  %v3268_v24 = vld [vmem:[#allocation7 + $0x4f0] sm:$0xf]  ;;  %v2885_v4 = vor.u32 %v3843_v35, %v2884_v29  ;;  %v3831_v30 = vld [vmem:[#allocation7 + $0x1a4] sm:$0xf0]  ;;  %v3772_v35 = vld [vmem:[#allocation7 + $0x8e0] sm:$0xf] }
  0xdc   :  { %2428 = vmatpush.bf16.msra.mxu3 %v3341_v25  ;;  %v2023_v13 = vpop.f32.mrf.mxu0  ;;  %v2041_v20 = vpop.f32.mrf.mxu1  ;;  %v2692_v25 = vld [vmem:[#allocation7 + $0x70] sm:$0xf]  ;;  %v3269_v38 = vor.u32 %v3939_v22, %v3268_v24  ;;  %v3870_v24 = vld [vmem:[#allocation7 + $0x2e4] sm:$0xf]  ;;  %v3006_v22 = vld [vmem:[#allocation7 + $0x2f8] sm:$0xf0]  ;;  %v2837_v40 = vor.u32 %v3831_v30, %v2836_v31 }
  0xdd   :  { %v2024_v26 = vadd.f32 %v2023_v13, %v2006_v17  ;;  %2375 = vmatpush.bf16.msra.mxu0 %v2741_v48  ;;  %v4424_v32 = vpop.f32.mrf.mxu2  ;;  %v2693_v41 = vor.u32 %v3795_v28, %v2692_v25  ;;  %v2860_v48 = vld [vmem:[#allocation7 + $0x1c0] sm:$0xf]  ;;  %v3028_v17 = vld [vmem:[#allocation7 + $0x310] sm:$0xf]  ;;  %v3810_v31 = vld [vmem:[#allocation7 + $0x104] sm:$0xf] }
  0xde   :  { %2393 = vmatpush.bf16.msra.mxu1 %v2933_v51  ;;  %v4427_v15 = vpop.f32.mrf.mxu3  ;;  %v3837_v51 = vld [vmem:[#allocation7 + $0x1d4] sm:$0xf0]  ;;  %v3220_v13 = vld [vmem:[#allocation7 + $0x490] sm:$0xf]  ;;  %v3580_v25 = vld [vmem:[#allocation7 + $0x760] sm:$0xf]  ;;  %v3029_v28 = vor.u32 %v3879_v47, %v3028_v17 }
  0xdf   :  { %2411 = vmatpush.bf16.msra.mxu2 %v3125_v44  ;;  %v2042_v27 = vadd.f32 %v2041_v20, %v2024_v26  ;;  %v3933_v44 = vld [vmem:[#allocation7 + $0x4d4] sm:$0xf0]  ;;  %v3927_v26 = vld [vmem:[#allocation7 + $0x4a4] sm:$0xf0]  ;;  %v2644_v20 = vld [vmem:[#allocation7 + $0x10] sm:$0xf]  ;;  %v2861_v16 = vor.u32 %v3837_v51, %v2860_v48  ;;  %v3581_v48 = vor.u32 %v4017_v5, %v3580_v25 }
  0xe0   :  { %2429 = vmatpush.bf16.msra.mxu3 %v3317_v45  ;;  %v2668_v45 = vld [vmem:[#allocation7 + $0x40] sm:$0xf]  ;;  %v3245_v19 = vor.u32 %v3933_v44, %v3244_v43  ;;  %2313 = vmatmul.bf16.gmra.mxu0 %v4268_v57  ;;  %v3221_v29 = vor.u32 %v3927_v26, %v3220_v13  ;;  %v3009_v43 = vor.u32 %v3870_v24, %v3006_v22  ;;  %v3816_v44 = vld [vmem:[#allocation7 + $0x134] sm:$0xf]  ;;  %v2982_v17 = vld [vmem:[#allocation7 + $0x2c8] sm:$0xf0] }
  0xe1   :  { %2594 = vst [vmem:[#allocation8 + $0x30] sm:$0xff] %v2042_v27  ;;  %2376 = vmatpush.bf16.msra.mxu0 %v2717_v23  ;;  %v3822_v23 = vld [vmem:[#allocation7 + $0x164] sm:$0xf]  ;;  %2331 = vmatmul.bf16.gmra.mxu1 %v4270_v63  ;;  %v437_v27 = vsel %vm407_vm6, %v4422_v36, %v4430_v60  ;;  %v3556_v47 = vld [vmem:[#allocation7 + $0x730] sm:$0xf] }
  0xe2   :  { %2394 = vmatpush.bf16.msra.mxu1 %v2909_v14  ;;  %2349 = vmatmul.bf16.gmra.mxu2 %v4292_v2  ;;  %v2814_v14 = vld [vmem:[#allocation7 + $0x178] sm:$0xf0]  ;;  %v3532_v24 = vld [vmem:[#allocation7 + $0x700] sm:$0xf]  ;;  %v4005_v25 = vld [vmem:[#allocation7 + $0x714] sm:$0xf0] }
  0xe3   :  { %2412 = vmatpush.bf16.msra.mxu2 %v3101_v21  ;;  %v2669_v21 = vor.u32 %v3789_v46, %v2668_v45  ;;  %2367 = vmatmul.bf16.gmra.mxu3 %v4294_v8  ;;  %v2790_v45 = vld [vmem:[#allocation7 + $0x148] sm:$0xf0]  ;;  %v2766_v30 = vld [vmem:[#allocation7 + $0x118] sm:$0xf0]  ;;  %v3724_v5 = vld [vmem:[#allocation7 + $0x880] sm:$0xf] }
  0xe4   :  { %2430 = vmatpush.bf16.msra.mxu3 %v3293_v37  ;;  %v2026_v0 = vpop.f32.mrf.mxu0  ;;  %v2044_v9 = vpop.f32.mrf.mxu1  ;;  %v3783_v37 = vld [vmem:[#allocation7 + $0x24] sm:$0xf0]  ;;  %v2793_v26 = vor.u32 %v3816_v44, %v2790_v45  ;;  %v3852_v45 = vld [vmem:[#allocation7 + $0x254] sm:$0xf] }
  0xe5   :  { %v2027_v6 = vadd.f32 %v2026_v0, %v2009_v3  ;;  %2377 = vmatpush.bf16.msra.mxu0 %v2693_v41  ;;  %v2645_v49 = vor.u32 %v3783_v37, %v2644_v20  ;;  %v483_v3 = vsel %vm466_vm7, %v4433_v61, %v437_v27  ;;  %v3864_v0 = vld [vmem:[#allocation7 + $0x2b4] sm:$0xf]  ;;  %v443_v37 = vsel %vm408_vm8, %v4422_v36, %v4430_v60  ;;  %v4053_v27 = vld [vmem:[#allocation7 + $0x894] sm:$0xf0] }
  0xe6   :  { %2395 = vmatpush.bf16.msra.mxu1 %v2885_v4  ;;  %v4445_v41 = vpop.f32.mrf.mxu3  ;;  %v2817_v4 = vor.u32 %v3822_v23, %v2814_v14  ;;  %v2058_v13 = vadd.f32 %v4414_v18, %v483_v3  ;;  %v2985_v20 = vor.u32 %v3864_v0, %v2982_v17  ;;  %v3858_v23 = vld [vmem:[#allocation7 + $0x284] sm:$0xf]  ;;  %v2958_v14 = vld [vmem:[#allocation7 + $0x298] sm:$0xf0]  ;;  %v3725_v44 = vor.u32 %v4053_v27, %v3724_v5  ;;  %v2934_v3 = vld [vmem:[#allocation7 + $0x268] sm:$0xf0] }
  0xe7   :  { %2413 = vmatpush.bf16.msra.mxu2 %v3077_v54  ;;  %v2045_v33 = vadd.f32 %v2044_v9, %v2027_v6  ;;  %v4065_v54 = vld [vmem:[#allocation7 + $0x8f4] sm:$0xf0]  ;;  %v4011_v9 = vld [vmem:[#allocation7 + $0x744] sm:$0xf0]  ;;  %v3700_v0 = vld [vmem:[#allocation7 + $0x850] sm:$0xf] }
  0xe8   :  { %2431 = vmatpush.bf16.msra.mxu3 %v3269_v38  ;;  %v4443_v38 = vpop.f32.mrf.mxu2  ;;  %v3773_v51 = vor.u32 %v4065_v54, %v3772_v35  ;;  %v2076_v18 = vadd.f32 %v4418_v1, %v2058_v13  ;;  %v3533_v1 = vor.u32 %v4005_v25, %v3532_v24  ;;  %v4047_v17 = vld [vmem:[#allocation7 + $0x864] sm:$0xf0] }
  0xe9   :  { %2600 = vst [vmem:[#allocation8 + $0x60] sm:$0xff] %v2045_v33  ;;  %2378 = vmatpush.bf16.msra.mxu0 %v2669_v21  ;;  %v3557_v21 = vor.u32 %v4011_v9, %v3556_v47  ;;  %v449_v47 = vsel %vm409_vm10, %v4422_v36, %v4430_v60  ;;  %v2937_v9 = vor.u32 %v3852_v45, %v2934_v3 }
  0xea   :  { %2396 = vmatpush.bf16.msra.mxu1 %v2861_v16 }
  0xeb   :  { %2414 = vmatpush.bf16.msra.mxu2 %v3053_v12  ;;  %v3748_v12 = vld [vmem:[#allocation7 + $0x8b0] sm:$0xf] }
  0xec   :  { %2432 = vmatpush.bf16.msra.mxu3 %v3245_v19  ;;  %v2028_v46 = vpop.f32.mrf.mxu0  ;;  %v2046_v6 = vpop.f32.mrf.mxu1  ;;  %v4059_v19 = vld [vmem:[#allocation7 + $0x8c4] sm:$0xf0] }
  0xed   :  { %2379 = vmatpush.bf16.msra.mxu0 %v2645_v49  ;;  %v3749_v16 = vor.u32 %v4059_v19, %v3748_v12  ;;  %v2769_v49 = vor.u32 %v3810_v31, %v2766_v30  ;;  %v3508_v46 = vld [vmem:[#allocation7 + $0x6d0] sm:$0xf]  ;;  %v3798_v12 = vld [vmem:[#allocation7 + $0xa4] sm:$0xf]  ;;  %v2718_v19 = vld [vmem:[#allocation7 + $0xb8] sm:$0xf0] }
  0xee   :  { %2397 = vmatpush.bf16.msra.mxu1 %v2837_v40  ;;  %v2082_v22 = vpop.f32.mrf.mxu3  ;;  %v2961_v40 = vor.u32 %v3858_v23, %v2958_v14  ;;  %v3993_v30 = vld [vmem:[#allocation7 + $0x6b4] sm:$0xf0]  ;;  %v495_v14 = vsel %vm468_vm11, %v4433_v61, %v449_v47  ;;  %v3834_v47 = vld [vmem:[#allocation7 + $0x1c4] sm:$0xf] }
  0xef   :  { %2415 = vmatpush.bf16.msra.mxu2 %v3029_v28  ;;  %v489_v28 = vsel %vm467_vm9, %v4433_v61, %v443_v37  ;;  %v3484_v37 = vld [vmem:[#allocation7 + $0x6a0] sm:$0xf]  ;;  %v4041_v23 = vld [vmem:[#allocation7 + $0x834] sm:$0xf0]  ;;  %v2063_v61 = vadd.f32 %v4443_v38, %v495_v14  ;;  %v3412_v14 = vld [vmem:[#allocation7 + $0x610] sm:$0xf] }
  0xf0   :  { %2433 = vmatpush.bf16.msra.mxu3 %v3221_v29  ;;  %v2064_v33 = vpop.f32.mrf.mxu2  ;;  %2380 = vmatmul.bf16.vlgmr.msra.gmra.mxu0 %v4242_v53 }
  0xf1   :  { %2444 = vmatpush.bf16.msrb.mxu0 %v3581_v48  ;;  %v2060_v48 = vadd.f32 %v4424_v32, %v489_v28  ;;  %2398 = vmatmul.bf16.vlgmr.msra.gmra.mxu1 %v4245_v58  ;;  %v3676_v33 = vld [vmem:[#allocation7 + $0x820] sm:$0xf]  ;;  %v3792_v28 = vld [vmem:[#allocation7 + $0x74] sm:$0xf]  ;;  %v2081_v38 = vadd.f32 %v4445_v41, %v2063_v61  ;;  %v3390_v61 = vld [vmem:[#allocation7 + $0x5f8] sm:$0xf0] }
  0xf2   :  { %2462 = vmatpush.bf16.msrb.mxu1 %v3773_v51  ;;  %2416 = vmatmul.bf16.vlgmr.msra.gmra.mxu2 %v4247_v59  ;;  %v3999_v51 = vld [vmem:[#allocation7 + $0x6e4] sm:$0xf0] }
  0xf3   :  { %2480 = vmatpush.bf16.msrb.mxu2 %v2817_v4  ;;  %v3804_v4 = vld [vmem:[#allocation7 + $0xd4] sm:$0xf]  ;;  %2434 = vmatmul.bf16.vlgmr.msra.gmra.mxu3 %v4249_v62  ;;  %v2078_v36 = vadd.f32 %v4427_v15, %v2060_v48  ;;  %v2670_v48 = vld [vmem:[#allocation7 + $0x58] sm:$0xf0] }
  0xf4   :  { %2498 = vmatpush.bf16.msrb.mxu3 %v3009_v43  ;;  %v2093_v29 = vpop.f32.mrf.mxu0  ;;  %v2111_v54 = vpop.f32.mrf.mxu1  ;;  %v2742_v43 = vld [vmem:[#allocation7 + $0xe8] sm:$0xf0]  ;;  %v3840_v15 = vld [vmem:[#allocation7 + $0x1f4] sm:$0xf] }
  0xf5   :  { %2445 = vmatpush.bf16.msrb.mxu0 %v3557_v21  ;;  %v2094_v35 = vadd.f32 %v2093_v29, %v2076_v18  ;;  %v2745_v32 = vor.u32 %v3804_v4, %v2742_v43  ;;  %v3846_v21 = vld [vmem:[#allocation7 + $0x224] sm:$0xf]  ;;  %v2721_v18 = vor.u32 %v3798_v12, %v2718_v19  ;;  %v2694_v29 = vld [vmem:[#allocation7 + $0x88] sm:$0xf0]  ;;  %v3987_v4 = vld [vmem:[#allocation7 + $0x684] sm:$0xf0] }
  0xf6   :  { %2463 = vmatpush.bf16.msrb.mxu1 %v3749_v16  ;;  %v2910_v16 = vld [vmem:[#allocation7 + $0x238] sm:$0xf0]  ;;  %v2147_v31 = vpop.f32.mrf.mxu3  ;;  %v3652_v43 = vld [vmem:[#allocation7 + $0x7f0] sm:$0xf]  ;;  %v2697_v45 = vor.u32 %v3792_v28, %v2694_v29  ;;  %v3981_v19 = vld [vmem:[#allocation7 + $0x654] sm:$0xf0] }
  0xf7   :  { %2481 = vmatpush.bf16.msrb.mxu2 %v2793_v26  ;;  %v2112_v6 = vadd.f32 %v2111_v54, %v2094_v35  ;;  %v3509_v26 = vor.u32 %v3999_v51, %v3508_v46  ;;  %v2913_v27 = vor.u32 %v3846_v21, %v2910_v16  ;;  %v3485_v35 = vor.u32 %v3993_v30, %v3484_v37  ;;  %v3786_v46 = vld [vmem:[#allocation7 + $0x44] sm:$0xf]  ;;  %v3780_v16 = vld [vmem:[#allocation7 + $0x14] sm:$0xf]  ;;  %v2646_v37 = vld [vmem:[#allocation7 + $0x28] sm:$0xf0] }
  0xf8   :  { %2499 = vmatpush.bf16.msrb.mxu3 %v2985_v20  ;;  %v2129_v13 = vpop.f32.mrf.mxu2  ;;  %v3701_v20 = vor.u32 %v4047_v17, %v3700_v0  ;;  %v3677_v54 = vor.u32 %v4041_v23, %v3676_v33  ;;  %v2673_v21 = vor.u32 %v3786_v46, %v2670_v48  ;;  %v3828_v33 = vld [vmem:[#allocation7 + $0x194] sm:$0xf]  ;;  %v2838_v23 = vld [vmem:[#allocation7 + $0x1a8] sm:$0xf0]  ;;  %v4062_v28 = vld [vmem:[#allocation7 + $0x8e4] sm:$0xf] }
  0xf9   :  { %2446 = vmatpush.bf16.msrb.mxu0 %v3533_v1  ;;  %v2130_v60 = vadd.f32 %v2129_v13, %v2112_v6  ;;  %v4035_v1 = vld [vmem:[#allocation7 + $0x804] sm:$0xf0]  ;;  %v2862_v6 = vld [vmem:[#allocation7 + $0x1d8] sm:$0xf0]  ;;  %v3628_v13 = vld [vmem:[#allocation7 + $0x7c0] sm:$0xf] }
  0xfa   :  { %2464 = vmatpush.bf16.msrb.mxu1 %v3725_v44  ;;  %v3653_v17 = vor.u32 %v4035_v1, %v3652_v43  ;;  %v2865_v30 = vor.u32 %v3834_v47, %v2862_v6  ;;  %v3774_v29 = vld [vmem:[#allocation7 + $0x8f8] sm:$0xf0] }
  0xfb   :  { %2482 = vmatpush.bf16.msrb.mxu2 %v2769_v49  ;;  %v2148_v22 = vadd.f32 %v2147_v31, %v2130_v60  ;;  %v2886_v49 = vld [vmem:[#allocation7 + $0x208] sm:$0xf0]  ;;  %v3777_v48 = vor.u32 %v4062_v28, %v3774_v29  ;;  %v3996_v29 = vld [vmem:[#allocation7 + $0x6d4] sm:$0xf] }
  0xfc   :  { %2500 = vmatpush.bf16.msrb.mxu3 %v2961_v40  ;;  %v2095_v24 = vpop.f32.mrf.mxu0  ;;  %v2113_v5 = vpop.f32.mrf.mxu1  ;;  %v3460_v40 = vld [vmem:[#allocation7 + $0x670] sm:$0xf]  ;;  %v2889_v3 = vor.u32 %v3840_v15, %v2886_v49  ;;  %v3918_v15 = vld [vmem:[#allocation7 + $0x464] sm:$0xf]  ;;  %v2841_v49 = vor.u32 %v3828_v33, %v2838_v23  ;;  %v3726_v23 = vld [vmem:[#allocation7 + $0x898] sm:$0xf0] }
  0xfd   :  { %v2096_v25 = vadd.f32 %v2095_v24, %v2078_v36  ;;  %2447 = vmatpush.bf16.msrb.mxu0 %v3509_v26  ;;  %2589 = vst [vmem:[#allocation8 + $0x8] sm:$0xff] %v2148_v22  ;;  %v3461_v0 = vor.u32 %v3987_v4, %v3460_v40  ;;  %v4029_v26 = vld [vmem:[#allocation7 + $0x7d4] sm:$0xf0]  ;;  %v3604_v22 = vld [vmem:[#allocation7 + $0x790] sm:$0xf] }
  0xfe   :  { %2465 = vmatpush.bf16.msrb.mxu1 %v3701_v20  ;;  %v2149_v12 = vpop.f32.mrf.mxu3  ;;  %v3629_v24 = vor.u32 %v4029_v26, %v3628_v13  ;;  %v3198_v40 = vld [vmem:[#allocation7 + $0x478] sm:$0xf0]  ;;  %v3966_v4 = vld [vmem:[#allocation7 + $0x5e4] sm:$0xf]  ;;  %v3174_v13 = vld [vmem:[#allocation7 + $0x448] sm:$0xf0] }
  0xff   :  { %2483 = vmatpush.bf16.msrb.mxu2 %v2745_v32  ;;  %v2114_v44 = vadd.f32 %v2113_v5, %v2096_v25  ;;  %v3436_v32 = vld [vmem:[#allocation7 + $0x640] sm:$0xf]  ;;  %v4023_v25 = vld [vmem:[#allocation7 + $0x7a4] sm:$0xf0]  ;;  %v4014_v5 = vld [vmem:[#allocation7 + $0x764] sm:$0xf]  ;;  %v3201_v47 = vor.u32 %v3918_v15, %v3198_v40  ;;  %v3393_v6 = vor.u32 %v3966_v4, %v3390_v61 }
 0x100   :  { %2501 = vmatpush.bf16.msrb.mxu3 %v2937_v9  ;;  %v2131_v51 = vpop.f32.mrf.mxu2  ;;  %v3437_v41 = vor.u32 %v3981_v19, %v3436_v32  ;;  %2385 = vmatmul.bf16.gmra.mxu0 %v4264_v50  ;;  %v4056_v32 = vld [vmem:[#allocation7 + $0x8b4] sm:$0xf]  ;;  %v4050_v33 = vld [vmem:[#allocation7 + $0x884] sm:$0xf]  ;;  %v3510_v15 = vld [vmem:[#allocation7 + $0x6e8] sm:$0xf0] }
 0x101   :  { %2448 = vmatpush.bf16.msrb.mxu0 %v3485_v35  ;;  %v2132_v9 = vadd.f32 %v2131_v51, %v2114_v44  ;;  %2403 = vmatmul.bf16.gmra.mxu1 %v4266_v56  ;;  %v3605_v44 = vor.u32 %v4023_v25, %v3604_v22  ;;  %v4008_v51 = vld [vmem:[#allocation7 + $0x734] sm:$0xf]  ;;  %v3342_v22 = vld [vmem:[#allocation7 + $0x598] sm:$0xf0]  ;;  %v3729_v28 = vor.u32 %v4050_v33, %v3726_v23  ;;  %v3702_v40 = vld [vmem:[#allocation7 + $0x868] sm:$0xf0] }
 0x102   :  { %2466 = vmatpush.bf16.msrb.mxu1 %v3677_v54  ;;  %2421 = vmatmul.bf16.gmra.mxu2 %v4268_v57  ;;  %v2649_v54 = vor.u32 %v3780_v16, %v2646_v37  ;;  %v3960_v26 = vld [vmem:[#allocation7 + $0x5b4] sm:$0xf]  ;;  %v3126_v61 = vld [vmem:[#allocation7 + $0x3e8] sm:$0xf0] }
 0x103   :  { %2484 = vmatpush.bf16.msrb.mxu2 %v2721_v18  ;;  %v2150_v36 = vadd.f32 %v2149_v12, %v2132_v9  ;;  %v3975_v18 = vld [vmem:[#allocation7 + $0x624] sm:$0xf0]  ;;  %2439 = vmatmul.bf16.gmra.mxu3 %v4270_v63  ;;  %v3912_v9 = vld [vmem:[#allocation7 + $0x434] sm:$0xf]  ;;  %v3654_v33 = vld [vmem:[#allocation7 + $0x808] sm:$0xf0] }
 0x104   :  { %2502 = vmatpush.bf16.msrb.mxu3 %v2913_v27  ;;  %v2098_v20 = vpop.f32.mrf.mxu0  ;;  %v2116_v31 = vpop.f32.mrf.mxu1  ;;  %v3582_v27 = vld [vmem:[#allocation7 + $0x778] sm:$0xf0]  ;;  %v3413_v1 = vor.u32 %v3975_v18, %v3412_v14  ;;  %v3177_v37 = vor.u32 %v3912_v9, %v3174_v13  ;;  %v3906_v14 = vld [vmem:[#allocation7 + $0x404] sm:$0xf]  ;;  %v3900_v4 = vld [vmem:[#allocation7 + $0x3d4] sm:$0xf] }
 0x105   :  { %v2099_v60 = vadd.f32 %v2098_v20, %v2081_v38  ;;  %2449 = vmatpush.bf16.msrb.mxu0 %v3461_v0  ;;  %2595 = vst [vmem:[#allocation8 + $0x38] sm:$0xff] %v2150_v36  ;;  %v3585_v46 = vor.u32 %v4014_v5, %v3582_v27  ;;  %v3558_v0 = vld [vmem:[#allocation7 + $0x748] sm:$0xf0]  ;;  %v3954_v18 = vld [vmem:[#allocation7 + $0x584] sm:$0xf] }
 0x106   :  { %2467 = vmatpush.bf16.msrb.mxu1 %v3653_v17  ;;  %v3750_v38 = vld [vmem:[#allocation7 + $0x8c8] sm:$0xf0]  ;;  %v3888_v23 = vld [vmem:[#allocation7 + $0x374] sm:$0xf] }
 0x107   :  { %2485 = vmatpush.bf16.msrb.mxu2 %v2697_v45  ;;  %v2117_v35 = vadd.f32 %v2116_v31, %v2099_v60  ;;  %v3366_v20 = vld [vmem:[#allocation7 + $0x5c8] sm:$0xf0]  ;;  %v3753_v16 = vor.u32 %v4056_v32, %v3750_v38  ;;  %v4002_v60 = vld [vmem:[#allocation7 + $0x704] sm:$0xf]  ;;  %v3534_v31 = vld [vmem:[#allocation7 + $0x718] sm:$0xf0] }
 0x108   :  { %2503 = vmatpush.bf16.msrb.mxu3 %v2889_v3  ;;  %v2134_v43 = vpop.f32.mrf.mxu2  ;;  %v2152_v3 = vpop.f32.mrf.mxu3  ;;  %v3369_v36 = vor.u32 %v3960_v26, %v3366_v20  ;;  %v3537_v27 = vor.u32 %v4002_v60, %v3534_v31  ;;  %v3102_v32 = vld [vmem:[#allocation7 + $0x3b8] sm:$0xf0]  ;;  %v3942_v38 = vld [vmem:[#allocation7 + $0x524] sm:$0xf] }
 0x109   :  { %2450 = vmatpush.bf16.msrb.mxu0 %v3437_v41  ;;  %v2135_v45 = vadd.f32 %v2134_v43, %v2117_v35  ;;  %v3948_v43 = vld [vmem:[#allocation7 + $0x554] sm:$0xf] }
 0x10a   :  { %2468 = vmatpush.bf16.msrb.mxu1 %v3629_v24  ;;  %v3150_v24 = vld [vmem:[#allocation7 + $0x418] sm:$0xf0] }
 0x10b   :  { %2486 = vmatpush.bf16.msrb.mxu2 %v2673_v21  ;;  %v2153_v12 = vadd.f32 %v2152_v3, %v2135_v45  ;;  %v3561_v21 = vor.u32 %v4008_v51, %v3558_v0  ;;  %v3153_v35 = vor.u32 %v3906_v14, %v3150_v24  ;;  %v3990_v3 = vld [vmem:[#allocation7 + $0x6a4] sm:$0xf]  ;;  %v3129_v51 = vor.u32 %v3900_v4, %v3126_v61  ;;  %v4497_v13 = vld [vmem:[#allocation5 + $0x2] ss:$4 sm:$0x3f] }
 0x10c   :  { %2504 = vmatpush.bf16.msrb.mxu3 %v2865_v30  ;;  %v2100_v17 = vpop.f32.mrf.mxu0  ;;  %v2118_v19 = vpop.f32.mrf.mxu1  ;;  %v4500_v26 = vperm.slane %v4497_v13, 2  ;;  %v3078_v14 = vld [vmem:[#allocation7 + $0x388] sm:$0xf0]  ;;  %v4026_v4 = vld [vmem:[#allocation7 + $0x7c4] sm:$0xf] }
 0x10d   :  { %2451 = vmatpush.bf16.msrb.mxu0 %v3413_v1  ;;  %2601 = vst [vmem:[#allocation8 + $0x68] sm:$0xff] %v2153_v12  ;;  %v3318_v1 = vld [vmem:[#allocation7 + $0x568] sm:$0xf0]  ;;  %v3678_v17 = vld [vmem:[#allocation7 + $0x838] sm:$0xf0] }
 0x10e   :  { %2469 = vmatpush.bf16.msrb.mxu1 %v3605_v44  ;;  %v3513_v44 = vor.u32 %v3996_v29, %v3510_v15  ;;  %v3321_v0 = vor.u32 %v3948_v43, %v3318_v1  ;;  %v4492_v12 = vld [vmem:[#allocation5 + $0x1] ss:$4 sm:$0x3f]  ;;  %v3978_v15 = vld [vmem:[#allocation7 + $0x644] sm:$0xf] }
 0x10f   :  { %2487 = vmatpush.bf16.msrb.mxu2 %v2649_v54  ;;  %v3345_v54 = vor.u32 %v3954_v18, %v3342_v22  ;;  %v4495_v19 = vperm.slane %v4492_v12, 2  ;;  %v3270_v24 = vld [vmem:[#allocation7 + $0x508] sm:$0xf0]  ;;  %v3630_v61 = vld [vmem:[#allocation7 + $0x7d8] sm:$0xf0] }
 0x110   :  { %2505 = vmatpush.bf16.msrb.mxu3 %v2841_v49  ;;  %v2136_v30 = vpop.f32.mrf.mxu2  ;;  %v2154_v41 = vpop.f32.mrf.mxu3  ;;  %v4044_v49 = vld [vmem:[#allocation7 + $0x854] sm:$0xf]  ;;  %2452 = vmatmul.bf16.vlgmr.msrb.gmra.mxu0 %v4281_v7  ;;  %v3882_v43 = vld [vmem:[#allocation7 + $0x344] sm:$0xf] }
 0x111   :  { %2516 = vmatpush.bf16.msra.mxu0 %v3201_v47  ;;  %2470 = vmatmul.bf16.vlgmr.msrb.gmra.mxu1 %v4286_v11  ;;  %v3705_v45 = vor.u32 %v4044_v49, %v3702_v40  ;;  %v3894_v47 = vld [vmem:[#allocation7 + $0x3a4] sm:$0xf]  ;;  %v4032_v30 = vld [vmem:[#allocation7 + $0x7f4] sm:$0xf]  ;;  %v3081_v49 = vor.u32 %v3888_v23, %v3078_v14 }
 0x112   :  { %2534 = vmatpush.bf16.msra.mxu1 %v3393_v6  ;;  %2488 = vmatmul.bf16.vlgmr.msrb.gmra.mxu2 %v4242_v53  ;;  %v4038_v53 = vld [vmem:[#allocation7 + $0x824] sm:$0xf]  ;;  %v3105_v60 = vor.u32 %v3894_v47, %v3102_v32  ;;  %v3936_v41 = vld [vmem:[#allocation7 + $0x4f4] sm:$0xf]  ;;  %v3657_v29 = vor.u32 %v4032_v30, %v3654_v33  ;;  %v3414_v32 = vld [vmem:[#allocation7 + $0x628] sm:$0xf0] }
 0x113   :  { %2552 = vmatpush.bf16.msra.mxu2 %v3585_v46  ;;  %2506 = vmatmul.bf16.vlgmr.msrb.gmra.mxu3 %v4245_v58  ;;  %v3486_v46 = vld [vmem:[#allocation7 + $0x6b8] sm:$0xf0]  ;;  %v3273_v40 = vor.u32 %v3936_v41, %v3270_v24  ;;  %v3972_v47 = vld [vmem:[#allocation7 + $0x614] sm:$0xf]  ;;  %v3222_v30 = vld [vmem:[#allocation7 + $0x4a8] sm:$0xf0] }
 0x114   :  { %2570 = vmatpush.bf16.msra.mxu3 %v3777_v48  ;;  %v4478_v25 = vpop.f32.mrf.mxu0  ;;  %v4480_v5 = vpop.f32.mrf.mxu1  ;;  %v3294_v58 = vld [vmem:[#allocation7 + $0x538] sm:$0xf0]  ;;  %v3417_v33 = vor.u32 %v3972_v47, %v3414_v32 }
 0x115   :  { %2517 = vmatpush.bf16.msra.mxu0 %v3177_v37  ;;  %v3984_v37 = vld [vmem:[#allocation7 + $0x674] sm:$0xf]  ;;  %v3297_v31 = vor.u32 %v3942_v38, %v3294_v58 }
 0x116   :  { %2535 = vmatpush.bf16.msra.mxu1 %v3369_v36  ;;  %v3462_v36 = vld [vmem:[#allocation7 + $0x688] sm:$0xf0] }
 0x117   :  { %2553 = vmatpush.bf16.msra.mxu2 %v3561_v21  ;;  %v3489_v21 = vor.u32 %v3990_v3, %v3486_v46  ;;  %v4504_v18 = vld [vmem:[#allocation5] ss:$4 sm:$0x3f] }
 0x118   :  { %2571 = vmatpush.bf16.msra.mxu3 %v3753_v16  ;;  %v4486_v48 = vpop.f32.mrf.mxu2  ;;  %v4488_v6 = vpop.f32.mrf.mxu3  ;;  %v3681_v16 = vor.u32 %v4038_v53, %v3678_v17  ;;  %v4507_v22 = vperm.slane %v4504_v18, 2  ;;  %v3246_v3 = vld [vmem:[#allocation7 + $0x4d8] sm:$0xf0]  ;;  %v3633_v17 = vor.u32 %v4026_v4, %v3630_v61 }
 0x119   :  { %2518 = vmatpush.bf16.msra.mxu0 %v3153_v35  ;;  %v3438_v35 = vld [vmem:[#allocation7 + $0x658] sm:$0xf0] }
 0x11a   :  { %2536 = vmatpush.bf16.msra.mxu1 %v3345_v54  ;;  %v3441_v53 = vor.u32 %v3978_v15, %v3438_v35  ;;  %v450_v35 = vsel %vm409_vm10, %v4495_v19, %v4500_v26 }
 0x11b   :  { %2554 = vmatpush.bf16.msra.mxu2 %v3537_v27  ;;  %v438_v27 = vsel %vm407_vm6, %v4495_v19, %v4500_v26  ;;  %v496_v61 = vsel %vm468_vm11, %v4507_v22, %v450_v35 }
 0x11c   :  { %2572 = vmatpush.bf16.msra.mxu3 %v3729_v28  ;;  %v4490_v9 = vpop.f32.mrf.mxu0  ;;  %v4502_v20 = vpop.f32.mrf.mxu1  ;;  %v3465_v28 = vor.u32 %v3984_v37, %v3462_v36  ;;  %v484_v46 = vsel %vm466_vm7, %v4507_v22, %v438_v27  ;;  %v3876_v37 = vld [vmem:[#allocation7 + $0x314] sm:$0xf] }
 0x11d   :  { %2519 = vmatpush.bf16.msra.mxu0 %v3129_v51  ;;  %v2166_v36 = vadd.f32 %v4478_v25, %v484_v46 }
 0x11e   :  { %2537 = vmatpush.bf16.msra.mxu1 %v3321_v0 }
 0x11f   :  { %2555 = vmatpush.bf16.msra.mxu2 %v3513_v44  ;;  %v3054_v44 = vld [vmem:[#allocation7 + $0x358] sm:$0xf0]  ;;  %v2184_v24 = vadd.f32 %v4480_v5, %v2166_v36 }
 0x120   :  { %2573 = vmatpush.bf16.msra.mxu3 %v3705_v45  ;;  %v4513_v54 = vpop.f32.mrf.mxu2  ;;  %v4515_v1 = vpop.f32.mrf.mxu3  ;;  %v3930_v45 = vld [vmem:[#allocation7 + $0x4c4] sm:$0xf]  ;;  %v3057_v38 = vor.u32 %v3882_v43, %v3054_v44  ;;  %2457 = vmatmul.bf16.gmra.mxu0 %v4292_v2 }
 0x121   :  { %2520 = vmatpush.bf16.msra.mxu0 %v3105_v60  ;;  %v3249_v58 = vor.u32 %v3930_v45, %v3246_v3  ;;  %v3030_v60 = vld [vmem:[#allocation7 + $0x328] sm:$0xf0]  ;;  %2475 = vmatmul.bf16.gmra.mxu1 %v4294_v8  ;;  %v2202_v15 = vadd.f32 %v4486_v48, %v2184_v24 }
 0x122   :  { %2538 = vmatpush.bf16.msra.mxu1 %v3297_v31  ;;  %2493 = vmatmul.bf16.gmra.mxu2 %v4264_v50  ;;  %v3924_v31 = vld [vmem:[#allocation7 + $0x494] sm:$0xf]  ;;  %v3033_v41 = vor.u32 %v3876_v37, %v3030_v60  ;;  %v444_v50 = vsel %vm408_vm8, %v4495_v19, %v4500_v26 }
 0x123   :  { %2556 = vmatpush.bf16.msra.mxu2 %v3489_v21  ;;  %v4020_v21 = vld [vmem:[#allocation7 + $0x794] sm:$0xf]  ;;  %2511 = vmatmul.bf16.gmra.mxu3 %v4266_v56  ;;  %v3225_v25 = vor.u32 %v3924_v31, %v3222_v30  ;;  %v490_v56 = vsel %vm467_vm9, %v4507_v22, %v444_v50 }
 0x124   :  { %2574 = vmatpush.bf16.msra.mxu3 %v3681_v16  ;;  %v2170_v51 = vpop.f32.mrf.mxu0  ;;  %v2188_v0 = vpop.f32.mrf.mxu1  ;;  %v3606_v16 = vld [vmem:[#allocation7 + $0x7a8] sm:$0xf0]  ;;  %v2168_v5 = vadd.f32 %v4490_v9, %v490_v56 }
 0x125   :  { %2521 = vmatpush.bf16.msra.mxu0 %v3081_v49  ;;  %v3609_v23 = vor.u32 %v4020_v21, %v3606_v16  ;;  %v2171_v3 = vadd.f32 %v2170_v51, %v496_v61 }
 0x126   :  { %2539 = vmatpush.bf16.msra.mxu1 %v3273_v40  ;;  %v2220_v40 = vadd.f32 %v4488_v6, %v2202_v15  ;;  %v2186_v44 = vadd.f32 %v4502_v20, %v2168_v5 }
 0x127   :  { %2557 = vmatpush.bf16.msra.mxu2 %v3465_v28  ;;  %v2189_v26 = vadd.f32 %v2188_v0, %v2171_v3 }
 0x128   :  { %2575 = vmatpush.bf16.msra.mxu3 %v3657_v29  ;;  %v2206_v14 = vpop.f32.mrf.mxu2  ;;  %v2224_v27 = vpop.f32.mrf.mxu3  ;;  %v2204_v9 = vadd.f32 %v4513_v54, %v2186_v44 }
 0x129   :  { %2522 = vmatpush.bf16.msra.mxu0 %v3057_v38  ;;  %v2207_v54 = vadd.f32 %v2206_v14, %v2189_v26 }
 0x12a   :  { %2540 = vmatpush.bf16.msra.mxu1 %v3249_v58  ;;  %v2222_v19 = vadd.f32 %v4515_v1, %v2204_v9  ;;  %v473_v1 = vperm.slane %v4504_v18, 3 }
 0x12b   :  { %2558 = vmatpush.bf16.msra.mxu2 %v3441_v53 }
 0x12c   :  { %2576 = vmatpush.bf16.msra.mxu3 %v3633_v17  ;;  %v2172_v28 = vpop.f32.mrf.mxu0  ;;  %v2190_v29 = vpop.f32.mrf.mxu1 }
 0x12d   :  { %2523 = vmatpush.bf16.msra.mxu0 %v3033_v41 }
 0x12e   :  { %2541 = vmatpush.bf16.msra.mxu1 %v3225_v25 }
 0x12f   :  { %2559 = vmatpush.bf16.msra.mxu2 %v3417_v33 }
 0x130   :  { %2577 = vmatpush.bf16.msra.mxu3 %v3609_v23  ;;  %v2208_v49 = vpop.f32.mrf.mxu2  ;;  %v2226_v4 = vpop.f32.mrf.mxu3  ;;  %2524 = vmatmul.bf16.vlgmr.msra.gmra.mxu0 %v4247_v59  ;;  %v2225_v59 = vadd.f32 %v2224_v27, %v2207_v54 }
 0x131   :  { %2542 = vmatmul.bf16.vlgmr.msra.gmra.mxu1 %v4249_v62  ;;  %v414_v62 = vperm.slane %v4492_v12, 3 }
 0x132   :  { %2560 = vmatmul.bf16.vlgmr.msra.gmra.mxu2 %v4281_v7 }
 0x133   :  { %2578 = vmatmul.bf16.vlgmr.msra.gmra.mxu3 %v4286_v11  ;;  %v427_v11 = vperm.slane %v4497_v13, 3 }
 0x134   :  { %v2237_v43 = vpop.f32.mrf.mxu0  ;;  %v2255_v48 = vpop.f32.mrf.mxu1 }
 0x135   :  { %v2238_v45 = vadd.f32 %v2237_v43, %v2220_v40  ;;  %v439_v0 = vsel %vm407_vm6, %v414_v62, %v427_v11  ;;  %v451_v24 = vsel %vm409_vm10, %v414_v62, %v427_v11 }
 0x136   :  { %v485_v36 = vsel %vm466_vm7, %v473_v1, %v439_v0  ;;  %v497_v15 = vsel %vm468_vm11, %v473_v1, %v451_v24 }
 0x137   :  { %v2256_v46 = vadd.f32 %v2255_v48, %v2238_v45 }
 0x138   :  { %v2273_v6 = vpop.f32.mrf.mxu2  ;;  %v2291_v20 = vpop.f32.mrf.mxu3 }
 0x139   :  { %2590 = vst [vmem:[#allocation8 + $0x10] sm:$0xff] %v2256_v46 }
 0x13c   :  { %v2239_v22 = vpop.f32.mrf.mxu0  ;;  %v2257_v17 = vpop.f32.mrf.mxu1 }
 0x13d   :  { %v2240_v53 = vadd.f32 %v2239_v22, %v2222_v19 }
 0x13f   :  { %v2258_v51 = vadd.f32 %v2257_v17, %v2240_v53 }
 0x140   :  { %v2275_v47 = vpop.f32.mrf.mxu2  ;;  %v2293_v32 = vpop.f32.mrf.mxu3  ;;  %2529 = vmatmul.bf16.gmra.mxu0 %v4268_v57  ;;  %v2274_v57 = vadd.f32 %v2273_v6, %v485_v36 }
 0x141   :  { %2596 = vst [vmem:[#allocation8 + $0x40] sm:$0xff] %v2258_v51  ;;  %2547 = vmatmul.bf16.gmra.mxu1 %v4270_v63 }
 0x142   :  { %2565 = vmatmul.bf16.gmra.mxu2 %v4292_v2  ;;  %v445_v2 = vsel %vm408_vm8, %v414_v62, %v427_v11  ;;  %v2292_v33 = vadd.f32 %v2291_v20, %v2274_v57 }
 0x143   :  { %2583 = vmatmul.bf16.gmra.mxu3 %v4294_v8  ;;  %v491_v8 = vsel %vm467_vm9, %v473_v1, %v445_v2  ;;  %v474_v1 = vperm.slane %v4504_v18, 4 }
 0x144   :  { %v2242_v7 = vpop.f32.mrf.mxu0  ;;  %v2260_v58 = vpop.f32.mrf.mxu1  ;;  %v2276_v25 = vadd.f32 %v2275_v47, %v491_v8 }
 0x145   :  { %v2243_v38 = vadd.f32 %v2242_v7, %v2225_v59 }
 0x146   :  { %v2294_v28 = vadd.f32 %v2293_v32, %v2276_v25 }
 0x147   :  { %v2261_v21 = vadd.f32 %v2260_v58, %v2243_v38  ;;  %v415_v38 = vperm.slane %v4492_v12, 4  ;;  %v428_v58 = vperm.slane %v4497_v13, 4 }
 0x148   :  { %v2278_v16 = vpop.f32.mrf.mxu2  ;;  %v2296_v37 = vpop.f32.mrf.mxu3 }
 0x149   :  { %2602 = vst [vmem:[#allocation8 + $0x70] sm:$0xff] %v2261_v21  ;;  %v2279_v4 = vadd.f32 %v2278_v16, %v497_v15  ;;  %v440_v0 = vsel %vm407_vm6, %v415_v38, %v428_v58  ;;  %v452_v24 = vsel %vm409_vm10, %v415_v38, %v428_v58 }
 0x14a   :  { %v486_v36 = vsel %vm466_vm7, %v474_v1, %v440_v0 }
 0x14b   :  { %v2297_v44 = vadd.f32 %v2296_v37, %v2279_v4 }
 0x14c   :  { %v2244_v60 = vpop.f32.mrf.mxu0  ;;  %v2262_v31 = vpop.f32.mrf.mxu1 }
 0x150   :  { %v2280_v30 = vpop.f32.mrf.mxu2  ;;  %v2298_v63 = vpop.f32.mrf.mxu3 }
 0x154   :  { %v2309_v23 = vpop.f32.mrf.mxu0  ;;  %v2327_v41 = vpop.f32.mrf.mxu1 }
 0x155   :  { %v2310_v14 = vadd.f32 %v2309_v23, %v2292_v33  ;;  %v446_v33 = vsel %vm408_vm8, %v415_v38, %v428_v58 }
 0x157   :  { %v2328_v50 = vadd.f32 %v2327_v41, %v2310_v14  ;;  %v492_v14 = vsel %vm467_vm9, %v474_v1, %v446_v33 }
 0x158   :  { %v2345_v27 = vpop.f32.mrf.mxu2  ;;  %v2363_v56 = vpop.f32.mrf.mxu3 }
 0x159   :  { %v2346_v29 = vadd.f32 %v2345_v27, %v2328_v50 }
 0x15b   :  { %v2364_v35 = vadd.f32 %v2363_v56, %v2346_v29  ;;  %v498_v29 = vsel %vm468_vm11, %v474_v1, %v452_v24 }
 0x15c   :  { %v2311_v5 = vpop.f32.mrf.mxu0  ;;  %v2329_v40 = vpop.f32.mrf.mxu1 }
 0x15d   :  { %v2312_v49 = vadd.f32 %v2311_v5, %v2294_v28  ;;  %2591 = vst [vmem:[#allocation8 + $0x18] sm:$0xff] %v2364_v35 }
 0x15f   :  { %v2330_v61 = vadd.f32 %v2329_v40, %v2312_v49 }
 0x160   :  { %v2347_v43 = vpop.f32.mrf.mxu2  ;;  %v2365_v48 = vpop.f32.mrf.mxu3 }
 0x161   :  { %v2348_v45 = vadd.f32 %v2347_v43, %v2330_v61 }
 0x163   :  { %v2366_v3 = vadd.f32 %v2365_v48, %v2348_v45 }
 0x164   :  { %v2314_v9 = vpop.f32.mrf.mxu0  ;;  %v2332_v6 = vpop.f32.mrf.mxu1 }
 0x165   :  { %v2315_v46 = vadd.f32 %v2314_v9, %v2297_v44  ;;  %2597 = vst [vmem:[#allocation8 + $0x48] sm:$0xff] %v2366_v3 }
 0x167   :  { %v2333_v19 = vadd.f32 %v2332_v6, %v2315_v46 }
 0x168   :  { %v2350_v26 = vpop.f32.mrf.mxu2  ;;  %v2368_v22 = vpop.f32.mrf.mxu3 }
 0x169   :  { %v2351_v20 = vadd.f32 %v2350_v26, %v2333_v19 }
 0x16b   :  { %v2369_v17 = vadd.f32 %v2368_v22, %v2351_v20 }
 0x16c   :  { %v2316_v53 = vpop.f32.mrf.mxu0  ;;  %v2334_v54 = vpop.f32.mrf.mxu1 }
 0x16d   :  { %2603 = vst [vmem:[#allocation8 + $0x78] sm:$0xff] %v2369_v17  ;;  %v416_v53 = vperm.slane %v4492_v12, 5  ;;  %v429_v17 = vperm.slane %v4497_v13, 5 }
 0x16f   :  { %v447_v12 = vsel %vm408_vm8, %v416_v53, %v429_v17  ;;  %v453_v39 = vsel %vm409_vm10, %v416_v53, %v429_v17 }
 0x170   :  { %v2352_v51 = vpop.f32.mrf.mxu2  ;;  %v2370_v47 = vpop.f32.mrf.mxu3 }
 0x174   :  { %v2381_v59 = vpop.f32.mrf.mxu0  ;;  %v2399_v32 = vpop.f32.mrf.mxu1 }
 0x175   :  { %v2382_v57 = vadd.f32 %v2381_v59, %v486_v36  ;;  %v475_v59 = vperm.slane %v4504_v18, 5 }
 0x177   :  { %v2400_v30 = vadd.f32 %v2399_v32, %v2382_v57  ;;  %v441_v32 = vsel %vm407_vm6, %v416_v53, %v429_v17  ;;  %v493_v18 = vsel %vm467_vm9, %v475_v59, %v447_v12  ;;  %v499_v55 = vsel %vm468_vm11, %v475_v59, %v453_v39 }
 0x178   :  { %v2417_v7 = vpop.f32.mrf.mxu2  ;;  %v2435_v62 = vpop.f32.mrf.mxu3 }
 0x179   :  { %v2418_v41 = vadd.f32 %v2417_v7, %v2400_v30 }
 0x17b   :  { %v2436_v27 = vadd.f32 %v2435_v62, %v2418_v41 }
 0x17c   :  { %v2383_v11 = vpop.f32.mrf.mxu0  ;;  %v2401_v21 = vpop.f32.mrf.mxu1 }
 0x17d   :  { %v2384_v25 = vadd.f32 %v2383_v11, %v492_v14  ;;  %v487_v11 = vsel %vm466_vm7, %v475_v59, %v441_v32 }
 0x17f   :  { %v2402_v15 = vadd.f32 %v2401_v21, %v2384_v25 }
 0x180   :  { %v2419_v16 = vpop.f32.mrf.mxu2  ;;  %v2437_v37 = vpop.f32.mrf.mxu3 }
 0x181   :  { %v2420_v49 = vadd.f32 %v2419_v16, %v2402_v15 }
 0x183   :  { %v2438_v43 = vadd.f32 %v2437_v37, %v2420_v49 }
 0x184   :  { %v2386_v60 = vpop.f32.mrf.mxu0  ;;  %v2404_v31 = vpop.f32.mrf.mxu1 }
 0x185   :  { %v2387_v40 = vadd.f32 %v2386_v60, %v498_v29 }
 0x187   :  { %v2405_v44 = vadd.f32 %v2404_v31, %v2387_v40 }
 0x188   :  { %v2422_v2 = vpop.f32.mrf.mxu2  ;;  %v2440_v63 = vpop.f32.mrf.mxu3 }
 0x189   :  { %v2423_v46 = vadd.f32 %v2422_v2, %v2405_v44 }
 0x18b   :  { %v2441_v26 = vadd.f32 %v2440_v63, %v2423_v46 }
 0x18c   :  { %v2388_v8 = vpop.f32.mrf.mxu0  ;;  %v2406_v23 = vpop.f32.mrf.mxu1 }
 0x190   :  { %v2424_v50 = vpop.f32.mrf.mxu2  ;;  %v2442_v28 = vpop.f32.mrf.mxu3 }
 0x194   :  { %v2453_v56 = vpop.f32.mrf.mxu0  ;;  %v2471_v35 = vpop.f32.mrf.mxu1 }
 0x195   :  { %v2454_v5 = vadd.f32 %v2453_v56, %v2436_v27 }
 0x197   :  { %v2472_v4 = vadd.f32 %v2471_v35, %v2454_v5 }
 0x198   :  { %v2489_v61 = vpop.f32.mrf.mxu2  ;;  %v2507_v45 = vpop.f32.mrf.mxu3 }
 0x199   :  { %2592 = vst [vmem:[#allocation8 + $0x20] sm:$0xff] %v2472_v4  ;;  %v2490_v21 = vadd.f32 %v2489_v61, %v487_v11 }
 0x19b   :  { %v2508_v1 = vadd.f32 %v2507_v45, %v2490_v21 }
 0x19c   :  { %v2455_v48 = vpop.f32.mrf.mxu0  ;;  %v2473_v3 = vpop.f32.mrf.mxu1 }
 0x19d   :  { %v2456_v9 = vadd.f32 %v2455_v48, %v2438_v43 }
 0x19f   :  { %v2474_v6 = vadd.f32 %v2473_v3, %v2456_v9 }
 0x1a0   :  { %v2491_v19 = vpop.f32.mrf.mxu2  ;;  %v2509_v20 = vpop.f32.mrf.mxu3 }
 0x1a1   :  { %2598 = vst [vmem:[#allocation8 + $0x50] sm:$0xff] %v2474_v6  ;;  %v2492_v36 = vadd.f32 %v2491_v19, %v493_v18 }
 0x1a3   :  { %v2510_v57 = vadd.f32 %v2509_v20, %v2492_v36 }
 0x1a4   :  { %v2458_v22 = vpop.f32.mrf.mxu0  ;;  %v2476_v51 = vpop.f32.mrf.mxu1 }
 0x1a5   :  { %v2459_v54 = vadd.f32 %v2458_v22, %v2441_v26 }
 0x1a7   :  { %v2477_v47 = vadd.f32 %v2476_v51, %v2459_v54 }
 0x1a8   :  { %v2494_v7 = vpop.f32.mrf.mxu2  ;;  %v2512_v62 = vpop.f32.mrf.mxu3 }
 0x1a9   :  { %2604 = vst [vmem:[#allocation8 + $0x80] sm:$0xff] %v2477_v47  ;;  %v2495_v23 = vadd.f32 %v2494_v7, %v499_v55 }
 0x1ab   :  { %v2513_v25 = vadd.f32 %v2512_v62, %v2495_v23 }
 0x1ac   :  { %v2460_v38 = vpop.f32.mrf.mxu0  ;;  %v2478_v58 = vpop.f32.mrf.mxu1 }
 0x1b0   :  { %v2496_v13 = vpop.f32.mrf.mxu2  ;;  %v2514_v0 = vpop.f32.mrf.mxu3 }
 0x1b4   :  { %v2525_v10 = vpop.f32.mrf.mxu0  ;;  %v2543_v37 = vpop.f32.mrf.mxu1 }
 0x1b5   :  { %v2526_v16 = vadd.f32 %v2525_v10, %v2508_v1 }
 0x1b7   :  { %v2544_v60 = vadd.f32 %v2543_v37, %v2526_v16 }
 0x1b8   :  { %v2561_v31 = vpop.f32.mrf.mxu2  ;;  %v2579_v30 = vpop.f32.mrf.mxu3 }
 0x1b9   :  { %v2562_v2 = vadd.f32 %v2561_v31, %v2544_v60 }
 0x1bb   :  { %v2580_v63 = vadd.f32 %v2579_v30, %v2562_v2 }
 0x1bc   :  { %v2527_v33 = vpop.f32.mrf.mxu0  ;;  %v2545_v34 = vpop.f32.mrf.mxu1 }
 0x1bd   :  { %v2528_v8 = vadd.f32 %v2527_v33, %v2510_v57  ;;  %2593 = vst [vmem:[#allocation8 + $0x28] sm:$0xff] %v2580_v63 }
 0x1bf   :  { %v2546_v14 = vadd.f32 %v2545_v34, %v2528_v8 }
 0x1c0   :  { %v2563_v41 = vpop.f32.mrf.mxu2  ;;  %v2581_v52 = vpop.f32.mrf.mxu3 }
 0x1c1   :  { %v2564_v24 = vadd.f32 %v2563_v41, %v2546_v14 }
 0x1c3   :  { %v2582_v27 = vadd.f32 %v2581_v52, %v2564_v24 }
 0x1c4   :  { %v2530_v50 = vpop.f32.mrf.mxu0  ;;  %v2548_v29 = vpop.f32.mrf.mxu1 }
 0x1c5   :  { %v2531_v28 = vadd.f32 %v2530_v50, %v2513_v25  ;;  %2599 = vst [vmem:[#allocation8 + $0x58] sm:$0xff] %v2582_v27 }
 0x1c7   :  { %v2549_v56 = vadd.f32 %v2548_v29, %v2531_v28 }
 0x1c8   :  { %v2566_v15 = vpop.f32.mrf.mxu2  ;;  %v2584_v5 = vpop.f32.mrf.mxu3 }
 0x1c9   :  { %v2567_v42 = vadd.f32 %v2566_v15, %v2549_v56 }
 0x1cb   :  { %v2585_v49 = vadd.f32 %v2584_v5, %v2567_v42 }
 0x1cc   :  { %v2532_v35 = vpop.f32.mrf.mxu0  ;;  %v2550_v40 = vpop.f32.mrf.mxu1 }
 0x1cd   :  { %2605 = vst [vmem:[#allocation8 + $0x88] sm:$0xff] %v2585_v49 }
 0x1ce   :  { %2618 = dma.vmem_to_hbm [thread:$0]  %s2611_s11, 2304, %s2613_s14, [#allocation4], %s4185_s25, %s4185_s25, %s4186_s26  }
 0x1d0   :  { %v2568_v4 = vpop.f32.mrf.mxu2  ;;  %v2586_v61 = vpop.f32.mrf.mxu3 }
 0x1d1   :  { %4181 = dma.done.wait [#allocation4], 2304  }
 0x1d2   :  { %4182 = vsyncadd [#allocation4], 4294964992 }
 0x1d3   :  { %2623 = vsyncpa [#allocation3], 1 }
 0x1d4   :  { %2624 = vsyncpa [#allocation6], 1 }
 0x1d5   :  { %2625 = vsyncpa [#allocation4], 1 }

</bundles_post_ra>
